<compile_context>
chip_gen: v7x
topology: tpu7x:2x2x1
jax: 0.10.0
libtpu: 0.0.40
codegen_flags: <defaults>
</compile_context>

<pallas_src>
import functools
import math

import jax
import jax.numpy as jnp
from jax.experimental import pallas as pl
from jax.experimental.pallas import tpu as pltpu


# ----------------------------------------------------------------------------
# Tiling helper
# ----------------------------------------------------------------------------
def _pick_tile(dim, cap, align):
    """Largest tile <= cap that divides `dim` and is a multiple of `align`;
    falls back to the full dim (always legal: block == full array dim)."""
    if dim <= cap:
        return dim
    t = cap
    while t >= align:
        if dim % t == 0:
            return t
        t -= align
    return dim


# ----------------------------------------------------------------------------
# Pallas kernels
# ----------------------------------------------------------------------------
def _linear_kernel(x_ref, w_ref, b_ref, o_ref, acc_ref, *, relu):
    # grid = (M//tm, N//tn, K//tk); x: [tm, tk] bf16, w: [tk, tn] bf16,
    # b: [1, tn] f32, acc: [tm, tn] f32 scratch, o: [tm, tn].
    @pl.when(pl.program_id(2) == 0)
    def _():
        acc_ref[...] = jnp.zeros_like(acc_ref)

    acc_ref[...] += jnp.dot(x_ref[...], w_ref[...],
                            preferred_element_type=jnp.float32)

    @pl.when(pl.program_id(2) == pl.num_programs(2) - 1)
    def _():
        y = acc_ref[...] + b_ref[...]
        if relu:
            y = jnp.maximum(y, 0.0)
        o_ref[...] = y.astype(o_ref.dtype)


def _add_layernorm_kernel(x_ref, y_ref, g_ref, b_ref, o_ref):
    # Fused residual add + LayerNorm (biased variance, eps=1e-5), f32 math.
    x = x_ref[...].astype(jnp.float32) + y_ref[...].astype(jnp.float32)
    mu = jnp.mean(x, axis=-1, keepdims=True)
    var = jnp.mean(jnp.square(x - mu), axis=-1, keepdims=True)
    y = (x - mu) * jax.lax.rsqrt(var + 1e-5)
    o_ref[...] = (y * g_ref[...] + b_ref[...]).astype(o_ref.dtype)


def _attention_kernel(qr_ref, kv_ref, qvalid_ref, kvalid_ref, o_ref,
                      *, n_heads, scale, causal):
    # Per-batch tile (grid over B only):
    #   qr: [1, Sq, 2D]  (Q | R fused projection of query)
    #   kv: [1, Sk, 2D]  (K | V fused projection of key/value)
    #   qvalid: [1, Sq, 1] int32, kvalid: [1, 1, Sk] int32
    #   o : [1, Sq, D]
    Sq = qr_ref.shape[1]
    Sk = kv_ref.shape[1]
    D = o_ref.shape[2]
    hd = D // n_heads

    qr = qr_ref[0]                      # [Sq, 2D] bf16
    kvp = kv_ref[0]                     # [Sk, 2D] bf16
    q = qr[:, :D]
    r = qr[:, D:].astype(jnp.float32)
    k = kvp[:, :D]
    v = kvp[:, D:]

    # Pad mask (1 bit per position) broadcast in-kernel; causal part via iota.
    pad_ok = qvalid_ref[0] * kvalid_ref[0]            # [Sq,1]*[1,Sk] -> [Sq,Sk]
    valid = pad_ok > 0
    if causal:
        row = jax.lax.broadcasted_iota(jnp.int32, (Sq, Sk), 0)
        col = jax.lax.broadcasted_iota(jnp.int32, (Sq, Sk), 1)
        valid = jnp.logical_and(valid, col <= row)

    # NOTE: reference uses scale = embedding_dim ** 1 / 2 == embedding_dim / 2.
    inv_scale = jnp.float32(1.0 / scale)
    neg_big = jnp.float32(-1e20)

    ctxs = []
    for h in range(n_heads):                          # static unroll over heads
        sl = slice(h * hd, (h + 1) * hd)
        # QK^T with contracting dims folded into the MXU op (no k.T transpose).
        energy = jax.lax.dot_general(
            q[:, sl], k[:, sl], (((1,), (1,)), ((), ())),
            preferred_element_type=jnp.float32)        # [Sq, Sk]
        energy = energy * inv_scale
        energy = jnp.where(valid, energy, neg_big)
        e = jnp.exp(energy - jnp.max(energy, axis=-1, keepdims=True))
        att = e * pl.reciprocal(jnp.sum(e, axis=-1, keepdims=True), approx=True)
        # TODO(synk): dropout(p=0) in the reference is an identity -> omitted.
        ctx = jnp.dot(att.astype(v.dtype), v[:, sl],
                      preferred_element_type=jnp.float32)  # [Sq, hd]
        # reference: v_change = final_mul * R_permute  (element-wise gate by R)
        ctxs.append(ctx * r[:, sl])

    # Single lane-dense [Sq, D] store.
    o_ref[0] = jnp.concatenate(ctxs, axis=-1).astype(o_ref.dtype)


# ----------------------------------------------------------------------------
# Pallas wrappers
# ----------------------------------------------------------------------------
def pallas_linear(x, p, relu=False, out_dtype=jnp.bfloat16):
    """x: [..., K] @ w[K, N] + b[1, N] with a tiled, pipelined MXU kernel."""
    lead = x.shape[:-1]
    K = x.shape[-1]
    x2 = x.reshape(-1, K).astype(jnp.bfloat16)
    M = x2.shape[0]
    w = p["w"]                                 # [K, N] bf16
    b = p["b"]                                 # [1, N] f32
    N = w.shape[1]

    tm = _pick_tile(M, 256, 8)
    tn = _pick_tile(N, 256, 128)
    tk = _pick_tile(K, 512, 128)
    grid = (M // tm, N // tn, K // tk)

    cost = pl.CostEstimate(
        flops=2 * M * N * K,
        transcendentals=0,
        bytes_accessed=x2.size * 2 + w.size * 2 + b.size * 4 + M * N * 2,
    )
    y = pl.pallas_call(
        functools.partial(_linear_kernel, relu=relu),
        out_shape=jax.ShapeDtypeStruct((M, N), out_dtype),
        grid_spec=pltpu.PrefetchScalarGridSpec(
            num_scalar_prefetch=0,
            grid=grid,
            in_specs=[
                pl.BlockSpec((tm, tk), lambda i, j, k: (i, k)),
                pl.BlockSpec((tk, tn), lambda i, j, k: (k, j)),
                pl.BlockSpec((1, tn), lambda i, j, k: (0, j)),
            ],
            out_specs=pl.BlockSpec((tm, tn), lambda i, j, k: (i, j)),
            scratch_shapes=[pltpu.VMEM((tm, tn), jnp.float32)],
        ),
        compiler_params=pltpu.CompilerParams(
            dimension_semantics=("parallel", "parallel", "arbitrary")),
        cost_estimate=cost,
    )(x2, w, b)
    return y.reshape(*lead, N)


def pallas_add_layernorm(a, b, p):
    """LayerNorm(a + b) with the residual add fused into the kernel."""
    lead = a.shape[:-1]
    D = a.shape[-1]
    a2 = a.reshape(-1, D)
    b2 = b.reshape(-1, D)
    M = a2.shape[0]
    tm = _pick_tile(M, 512, 8)
    grid = (M // tm,)

    y = pl.pallas_call(
        _add_layernorm_kernel,
        out_shape=jax.ShapeDtypeStruct((M, D), jnp.bfloat16),
        grid_spec=pltpu.PrefetchScalarGridSpec(
            num_scalar_prefetch=0,
            grid=grid,
            in_specs=[
                pl.BlockSpec((tm, D), lambda i: (i, 0)),
                pl.BlockSpec((tm, D), lambda i: (i, 0)),
                pl.BlockSpec((1, D), lambda i: (0, 0)),
                pl.BlockSpec((1, D), lambda i: (0, 0)),
            ],
            out_specs=pl.BlockSpec((tm, D), lambda i: (i, 0)),
        ),
        compiler_params=pltpu.CompilerParams(dimension_semantics=("parallel",)),
    )(a2, b2, p["g"], p["b"])
    return y.reshape(*lead, D)


def pallas_attention_core(qr, kv, q_valid, k_valid, *, n_heads, scale, causal,
                          out_dim):
    """qr: [B,Sq,2D]  kv: [B,Sk,2D]  q_valid: [B,Sq,1]  k_valid: [B,1,Sk]."""
    B, Sq, _ = qr.shape
    Sk = kv.shape[1]
    D = out_dim
    cost = pl.CostEstimate(
        flops=4 * B * Sq * Sk * D,
        transcendentals=B * n_heads * Sq * Sk,
        bytes_accessed=(qr.size + kv.size) * 2 + B * Sq * D * 2
                       + q_valid.size * 4 + k_valid.size * 4,
    )
    return pl.pallas_call(
        functools.partial(_attention_kernel, n_heads=n_heads, scale=scale,
                          causal=causal),
        out_shape=jax.ShapeDtypeStruct((B, Sq, D), jnp.bfloat16),
        grid_spec=pltpu.PrefetchScalarGridSpec(
            num_scalar_prefetch=0,
            grid=(B,),
            in_specs=[
                pl.BlockSpec((1, Sq, 2 * D), lambda b: (b, 0, 0)),
                pl.BlockSpec((1, Sk, 2 * D), lambda b: (b, 0, 0)),
                pl.BlockSpec((1, Sq, 1), lambda b: (b, 0, 0)),
                pl.BlockSpec((1, 1, Sk), lambda b: (b, 0, 0)),
            ],
            out_specs=pl.BlockSpec((1, Sq, D), lambda b: (b, 0, 0)),
        ),
        compiler_params=pltpu.CompilerParams(dimension_semantics=("parallel",)),
        cost_estimate=cost,
    )(qr, kv, q_valid, k_valid)


# ----------------------------------------------------------------------------
# Model modules (functional, parameters as dicts)
# ----------------------------------------------------------------------------
def self_attention(p, value, key, query, mask, *, n_heads, embed_dim):
    """SelfAttention.forward.
    mask = (q_valid [B,Sq] or None, k_valid [B,Sk] or None, causal: bool).
    TODO(synk): reference uses undefined `self.num_heads` / `self.embedding.q_dim`
                and permutes the *un-projected* 3-D `key`; the intended multi-head
                split (head_dim = embed_dim // n_heads) is implemented instead.
    TODO(synk): K/V projections fused into one matmul on `key`; `value is key`
                at every call site in this model so semantics are unchanged.
    """
    B, Sq, D = query.shape
    Sk = key.shape[1]

    qr = pallas_linear(query, p["qr"])     # [B, Sq, 2D]  (Q | R)
    kv = pallas_linear(key, p["kv"])       # [B, Sk, 2D]  (K | V)

    q_valid, k_valid, causal = mask
    if q_valid is None:
        q_valid = jnp.ones((B, Sq), jnp.int32)
    if k_valid is None:
        k_valid = jnp.ones((B, Sk), jnp.int32)

    scale = embed_dim ** 1 / 2.0           # faithful to reference: embed_dim / 2
    ctx = pallas_attention_core(
        qr, kv, q_valid[:, :, None], k_valid[:, None, :],
        n_heads=n_heads, scale=scale, causal=causal, out_dim=D)
    return pallas_linear(ctx, p["fc_out"])


def transformer_block(p, value, key, query, mask, *, n_heads, embed_dim):
    att_out = self_attention(p["attention"], value, key, query, mask,
                             n_heads=n_heads, embed_dim=embed_dim)
    x = pallas_add_layernorm(att_out, query, p["n1"])
    # TODO(synk): reference feed-forward is Sequential(Linear(d,4d), ReLU, Linear(d,4d))
    #             which is shape-inconsistent; implemented as Linear(d,4d)+ReLU+Linear(4d,d).
    ff = pallas_linear(x, p["ff1"], relu=True)
    ff = pallas_linear(ff, p["ff2"])
    # TODO(synk): dropout(p=0) is identity -> omitted.
    return pallas_add_layernorm(ff, x, p["n2"])


def decoder_block(p, x, value, key, src_mask, trg_mask, *, n_heads, embed_dim):
    att = self_attention(p["attention"], x, x, x, trg_mask,
                         n_heads=n_heads, embed_dim=embed_dim)
    out = pallas_add_layernorm(att, x, p["n1"])
    return transformer_block(p["transformer_block"], value, key, out, src_mask,
                             n_heads=n_heads, embed_dim=embed_dim)


def encoder(p, tokens, src_valid, *, n_heads, embed_dim):
    N, S = tokens.shape
    emb = p["tok_emb"][tokens]                           # JAX glue gather
    # TODO(synk): reference adds raw position *indices* to the embedding (shape bug);
    #             implemented as adding the positional embedding table lookup.
    pos = p["pos_emb"][jnp.arange(S)]
    out = (emb + pos[None, :, :]).astype(jnp.bfloat16)
    mask = (None, src_valid, False)
    for blk in p["blocks"]:
        out = transformer_block(blk, out, out, out, mask,
                                n_heads=n_heads, embed_dim=embed_dim)
    return out


def decoder(p, tokens, enc_out, src_valid, trg_valid, *, n_heads, embed_dim):
    N, S = tokens.shape
    emb = p["tok_emb"][tokens]
    pos = p["pos_emb"][jnp.arange(S)]
    out = (emb + pos[None, :, :]).astype(jnp.bfloat16)
    src_mask = (None, src_valid, False)                  # cross-attn: key padding
    trg_mask = (trg_valid, None, True)                   # self-attn: causal + q padding
    # TODO(synk): reference loop feeds raw token ids into each DecoderBlock and
    #             applies the vocab projection inside the loop (and returns None);
    #             implemented as the standard stacked-decoder + final projection.
    for blk in p["blocks"]:
        out = decoder_block(blk, out, enc_out, enc_out, src_mask, trg_mask,
                            n_heads=n_heads, embed_dim=embed_dim)
    return pallas_linear(out, p["linear"], out_dtype=jnp.float32)


def make_masks(src, trg, src_pad_idx, trg_pad_idx):
    # TODO(synk): reference reads undefined `self.pad_idx`; use src/trg pad indices.
    # Compact mask representation: 1-bit-per-position pad vectors; the causal
    # triangle and all broadcasting are generated inside the attention kernel.
    src_valid = (src != src_pad_idx).astype(jnp.int32)   # [B, Ss]
    trg_valid = (trg != trg_pad_idx).astype(jnp.int32)   # [B, Lt]
    return src_valid, trg_valid


def transformer_forward(params, src, trg, *, src_pad_idx, trg_pad_idx,
                        n_heads, embed_dim):
    src_valid, trg_valid = make_masks(src, trg, src_pad_idx, trg_pad_idx)
    # TODO(synk): reference calls nonexistent `self.embedding(src)`; the Encoder/Decoder
    #             own their token embeddings, so token ids are passed directly.
    enc_src = encoder(params["encoder"], src, src_valid,
                      n_heads=n_heads, embed_dim=embed_dim)
    # TODO(synk): reference swaps src/trg masks at the decoder call site (arg-order bug);
    #             standard semantics used: self-attn -> trg mask, cross-attn -> src mask.
    logits = decoder(params["decoder"], trg, enc_src, src_valid, trg_valid,
                     n_heads=n_heads, embed_dim=embed_dim)
    # TODO(synk): reference final `self.embedding.transpose_forward(out)` does not exist;
    #             decoder's Linear(d, 200) already produces the logits.
    return logits


# ----------------------------------------------------------------------------
# Deterministic parameter init (nn.Linear / nn.Embedding / nn.LayerNorm shapes)
# ----------------------------------------------------------------------------
def _init_linear(key, in_dim, out_dim):
    k1, k2 = jax.random.split(key)
    bound = 1.0 / math.sqrt(in_dim)
    return {
        "w": jax.random.uniform(k1, (in_dim, out_dim), jnp.float32,
                                -bound, bound).astype(jnp.bfloat16),
        "b": jax.random.uniform(k2, (1, out_dim), jnp.float32, -bound, bound),
    }


def _concat_linears(a, b):
    return {"w": jnp.concatenate([a["w"], b["w"]], axis=1),
            "b": jnp.concatenate([a["b"], b["b"]], axis=1)}


def _init_layernorm(dim):
    return {"g": jnp.ones((1, dim), jnp.float32),
            "b": jnp.zeros((1, dim), jnp.float32)}


def _init_attention(key, d):
    ks = jax.random.split(key, 5)
    q = _init_linear(ks[0], d, d)
    k = _init_linear(ks[1], d, d)
    v = _init_linear(ks[2], d, d)
    r = _init_linear(ks[3], d, d)
    return {
        "qr": _concat_linears(q, r),       # fused Q | R projection
        "kv": _concat_linears(k, v),       # fused K | V projection
        "fc_out": _init_linear(ks[4], d, d),
    }


def _init_tblock(key, d):
    ks = jax.random.split(key, 3)
    return {
        "attention": _init_attention(ks[0], d),
        "n1": _init_layernorm(d),
        "n2": _init_layernorm(d),
        "ff1": _init_linear(ks[1], d, 4 * d),
        "ff2": _init_linear(ks[2], 4 * d, d),
    }


def _init_dblock(key, d):
    ks = jax.random.split(key, 2)
    return {
        "attention": _init_attention(ks[0], d),
        "n1": _init_layernorm(d),
        "transformer_block": _init_tblock(ks[1], d),
    }


def init_transformer_params(key, src_vocab, embed_dim, num_layers,
                            max_length, dec_vocab=200, dec_max_len=200):
    ke, kd = jax.random.split(key)
    kes = jax.random.split(ke, num_layers + 2)
    enc = {
        "tok_emb": jax.random.normal(kes[0], (src_vocab, embed_dim), jnp.float32),
        "pos_emb": jax.random.normal(kes[1], (max_length, embed_dim), jnp.float32),
        "blocks": [_init_tblock(kes[2 + i], embed_dim) for i in range(num_layers)],
    }
    # decoder (reference hardcodes Decoder(200, ..., max_input_len=200))
    kds = jax.random.split(kd, num_layers + 3)
    dec = {
        "tok_emb": jax.random.normal(kds[0], (dec_vocab, embed_dim), jnp.float32),
        "pos_emb": jax.random.normal(kds[1], (dec_max_len, embed_dim), jnp.float32),
        "blocks": [_init_dblock(kds[3 + i], embed_dim) for i in range(num_layers)],
        "linear": _init_linear(kds[2], embed_dim, dec_vocab),
    }
    return {"encoder": enc, "decoder": dec}


# ----------------------------------------------------------------------------
# main
# ----------------------------------------------------------------------------
if __name__ == "__main__":
    B, S = 2, 8
    EMBED = 32
    HEADS = 4
    LAYERS = 2
    SRC_VOCAB = 20
    SRC_PAD_IDX = 0
    TRG_PAD_IDX = 0
    MAX_LEN = 16

    root = jax.random.PRNGKey(0)
    kp, ks, kt = jax.random.split(root, 3)

    params = init_transformer_params(kp, SRC_VOCAB, EMBED, LAYERS, MAX_LEN)

    src = jax.random.randint(ks, (B, S), 1, SRC_VOCAB, dtype=jnp.int32)
    trg = jax.random.randint(kt, (B, S), 1, 200, dtype=jnp.int32)

    fwd = jax.jit(functools.partial(
        transformer_forward,
        src_pad_idx=SRC_PAD_IDX, trg_pad_idx=TRG_PAD_IDX,
        n_heads=HEADS, embed_dim=EMBED))

    logits = fwd(params, src, trg)
    logits = jax.block_until_ready(logits)
    assert logits.shape == (B, S, 200), logits.shape
    assert bool(jnp.all(jnp.isfinite(logits)))
    print("KERNEL_OK")
</pallas_src>

<mosaic_0001>
module attributes {stable_mosaic.version = 11 : i64} {
  func.func @_linear_kernel(%arg0: i32, %arg1: i32, %arg2: i32, %arg3: memref<16x32xbf16, #tpu.memory_space<vmem>>, %arg4: memref<32x64xbf16, #tpu.memory_space<vmem>>, %arg5: memref<1x64xf32, #tpu.memory_space<vmem>>, %arg6: memref<16x64xbf16, #tpu.memory_space<vmem>>, %arg7: memref<16x64xf32, #tpu.memory_space<vmem>>) attributes {dimension_semantics = [#tpu.dimension_semantics<parallel>, #tpu.dimension_semantics<parallel>, #tpu.dimension_semantics<arbitrary>], iteration_bounds = array<i64: 1, 1, 1>, scalar_prefetch = 0 : i64, scratch_operands = 1 : i64, tpu.core_type = #tpu.core_type<tc>, window_params = [{transform_indices = @transform_0, window_bounds = array<i64: 16, 32>}, {transform_indices = @transform_1, window_bounds = array<i64: 32, 64>}, {transform_indices = @transform_2, window_bounds = array<i64: 1, 64>}, {transform_indices = @transform_3, window_bounds = array<i64: 16, 64>}]} {
    %c0_i32 = arith.constant 0 : i32
    %0 = arith.cmpi eq, %arg2, %c0_i32 : i32
    %1 = arith.extui %0 : i1 to i32
    %c0_i32_0 = arith.constant 0 : i32
    %2 = arith.cmpi ne, %1, %c0_i32_0 : i32
    scf.if %2 {
      %cst_10 = arith.constant 0.000000e+00 : f32
      %12 = vector.broadcast %cst_10 : f32 to vector<16x64xf32>
      %c0_11 = arith.constant 0 : index
      %c0_12 = arith.constant 0 : index
      %13 = vector.load %arg7[%c0_11, %c0_12] : memref<16x64xf32, #tpu.memory_space<vmem>>, vector<16x64xf32>
      tpu.vector_store %arg7[%c0_11, %c0_12], %12 {strides = array<i32>} : memref<16x64xf32, #tpu.memory_space<vmem>>, vector<16x64xf32>,
    } else {
    }
    %c0 = arith.constant 0 : index
    %c0_1 = arith.constant 0 : index
    %3 = vector.load %arg7[%c0, %c0_1] : memref<16x64xf32, #tpu.memory_space<vmem>>, vector<16x64xf32>
    %c0_2 = arith.constant 0 : index
    %c0_3 = arith.constant 0 : index
    %4 = vector.load %arg3[%c0_2, %c0_3] : memref<16x32xbf16, #tpu.memory_space<vmem>>, vector<16x32xbf16>
    %c0_4 = arith.constant 0 : index
    %c0_5 = arith.constant 0 : index
    %5 = vector.load %arg4[%c0_4, %c0_5] : memref<32x64xbf16, #tpu.memory_space<vmem>>, vector<32x64xbf16>
    %cst = arith.constant dense<0.000000e+00> : vector<16x64xf32>
    %6 = tpu.matmul %4, %5, %cst {dimension_numbers = #tpu.dot_dimension_numbers<[1], [0], [0], [1], [0, 0, 1, 1], [], []>} : vector<16x32xbf16>, vector<32x64xbf16>, vector<16x64xf32> -> vector<16x64xf32>
    %7 = arith.addf %3, %6 : vector<16x64xf32>
    %c0_6 = arith.constant 0 : index
    %c0_7 = arith.constant 0 : index
    %8 = vector.load %arg7[%c0_6, %c0_7] : memref<16x64xf32, #tpu.memory_space<vmem>>, vector<16x64xf32>
    tpu.vector_store %arg7[%c0_6, %c0_7], %7 {strides = array<i32>} : memref<16x64xf32, #tpu.memory_space<vmem>>, vector<16x64xf32>,
    %c0_i32_8 = arith.constant 0 : i32
    %9 = arith.cmpi eq, %arg2, %c0_i32_8 : i32
    %10 = arith.extui %9 : i1 to i32
    %c0_i32_9 = arith.constant 0 : i32
    %11 = arith.cmpi ne, %10, %c0_i32_9 : i32
    scf.if %11 {
      %c0_10 = arith.constant 0 : index
      %c0_11 = arith.constant 0 : index
      %12 = vector.load %arg7[%c0_10, %c0_11] : memref<16x64xf32, #tpu.memory_space<vmem>>, vector<16x64xf32>
      %c0_12 = arith.constant 0 : index
      %c0_13 = arith.constant 0 : index
      %13 = vector.load %arg5[%c0_12, %c0_13] : memref<1x64xf32, #tpu.memory_space<vmem>>, vector<1x64xf32>
      %14 = vector.broadcast %13 : vector<1x64xf32> to vector<16x64xf32>
      %15 = arith.addf %12, %14 : vector<16x64xf32>
      %16 = arith.truncf %15 : vector<16x64xf32> to vector<16x64xbf16>
      %c0_14 = arith.constant 0 : index
      %c0_15 = arith.constant 0 : index
      %17 = vector.load %arg6[%c0_14, %c0_15] : memref<16x64xbf16, #tpu.memory_space<vmem>>, vector<16x64xbf16>
      tpu.vector_store %arg6[%c0_14, %c0_15], %16 {strides = array<i32>} : memref<16x64xbf16, #tpu.memory_space<vmem>>, vector<16x64xbf16>,
    } else {
    }
    return
  }
  func.func @transform_0(%arg0: i32, %arg1: i32, %arg2: i32) -> (i32, i32) {
    %c0_i32 = arith.constant 0 : i32
    return %arg0, %arg2 : i32, i32
  }
  func.func @transform_1(%arg0: i32, %arg1: i32, %arg2: i32) -> (i32, i32) {
    %c0_i32 = arith.constant 0 : i32
    return %arg2, %arg1 : i32, i32
  }
  func.func @transform_2(%arg0: i32, %arg1: i32, %arg2: i32) -> (i32, i32) {
    %c0_i32 = arith.constant 0 : i32
    %c0_i32_0 = arith.constant 0 : i32
    return %c0_i32, %arg1 : i32, i32
  }
  func.func @transform_3(%arg0: i32, %arg1: i32, %arg2: i32) -> (i32, i32) {
    %c0_i32 = arith.constant 0 : i32
    return %arg0, %arg1 : i32, i32
  }
}

module attributes {stable_mosaic.version = 11 : i64} {
  func.func @_linear_kernel(%arg0: i32, %arg1: i32, %arg2: i32, %arg3: memref<16x32xbf16, #tpu.memory_space<vmem>>, %arg4: memref<32x32xbf16, #tpu.memory_space<vmem>>, %arg5: memref<1x32xf32, #tpu.memory_space<vmem>>, %arg6: memref<16x32xbf16, #tpu.memory_space<vmem>>, %arg7: memref<16x32xf32, #tpu.memory_space<vmem>>) attributes {dimension_semantics = [#tpu.dimension_semantics<parallel>, #tpu.dimension_semantics<parallel>, #tpu.dimension_semantics<arbitrary>], iteration_bounds = array<i64: 1, 1, 1>, scalar_prefetch = 0 : i64, scratch_operands = 1 : i64, tpu.core_type = #tpu.core_type<tc>, window_params = [{transform_indices = @transform_0, window_bounds = array<i64: 16, 32>}, {transform_indices = @transform_1, window_bounds = array<i64: 32, 32>}, {transform_indices = @transform_2, window_bounds = array<i64: 1, 32>}, {transform_indices = @transform_3, window_bounds = array<i64: 16, 32>}]} {
    %c0_i32 = arith.constant 0 : i32
    %0 = arith.cmpi eq, %arg2, %c0_i32 : i32
    %1 = arith.extui %0 : i1 to i32
    %c0_i32_0 = arith.constant 0 : i32
    %2 = arith.cmpi ne, %1, %c0_i32_0 : i32
    scf.if %2 {
      %cst_10 = arith.constant 0.000000e+00 : f32
      %12 = vector.broadcast %cst_10 : f32 to vector<16x32xf32>
      %c0_11 = arith.constant 0 : index
      %c0_12 = arith.constant 0 : index
      %13 = vector.load %arg7[%c0_11, %c0_12] : memref<16x32xf32, #tpu.memory_space<vmem>>, vector<16x32xf32>
      tpu.vector_store %arg7[%c0_11, %c0_12], %12 {strides = array<i32>} : memref<16x32xf32, #tpu.memory_space<vmem>>, vector<16x32xf32>,
    } else {
    }
    %c0 = arith.constant 0 : index
    %c0_1 = arith.constant 0 : index
    %3 = vector.load %arg7[%c0, %c0_1] : memref<16x32xf32, #tpu.memory_space<vmem>>, vector<16x32xf32>
    %c0_2 = arith.constant 0 : index
    %c0_3 = arith.constant 0 : index
    %4 = vector.load %arg3[%c0_2, %c0_3] : memref<16x32xbf16, #tpu.memory_space<vmem>>, vector<16x32xbf16>
    %c0_4 = arith.constant 0 : index
    %c0_5 = arith.constant 0 : index
    %5 = vector.load %arg4[%c0_4, %c0_5] : memref<32x32xbf16, #tpu.memory_space<vmem>>, vector<32x32xbf16>
    %cst = arith.constant dense<0.000000e+00> : vector<16x32xf32>
    %6 = tpu.matmul %4, %5, %cst {dimension_numbers = #tpu.dot_dimension_numbers<[1], [0], [0], [1], [0, 0, 1, 1], [], []>} : vector<16x32xbf16>, vector<32x32xbf16>, vector<16x32xf32> -> vector<16x32xf32>
    %7 = arith.addf %3, %6 : vector<16x32xf32>
    %c0_6 = arith.constant 0 : index
    %c0_7 = arith.constant 0 : index
    %8 = vector.load %arg7[%c0_6, %c0_7] : memref<16x32xf32, #tpu.memory_space<vmem>>, vector<16x32xf32>
    tpu.vector_store %arg7[%c0_6, %c0_7], %7 {strides = array<i32>} : memref<16x32xf32, #tpu.memory_space<vmem>>, vector<16x32xf32>,
    %c0_i32_8 = arith.constant 0 : i32
    %9 = arith.cmpi eq, %arg2, %c0_i32_8 : i32
    %10 = arith.extui %9 : i1 to i32
    %c0_i32_9 = arith.constant 0 : i32
    %11 = arith.cmpi ne, %10, %c0_i32_9 : i32
    scf.if %11 {
      %c0_10 = arith.constant 0 : index
      %c0_11 = arith.constant 0 : index
      %12 = vector.load %arg7[%c0_10, %c0_11] : memref<16x32xf32, #tpu.memory_space<vmem>>, vector<16x32xf32>
      %c0_12 = arith.constant 0 : index
      %c0_13 = arith.constant 0 : index
      %13 = vector.load %arg5[%c0_12, %c0_13] : memref<1x32xf32, #tpu.memory_space<vmem>>, vector<1x32xf32>
      %14 = vector.broadcast %13 : vector<1x32xf32> to vector<16x32xf32>
      %15 = arith.addf %12, %14 : vector<16x32xf32>
      %16 = arith.truncf %15 : vector<16x32xf32> to vector<16x32xbf16>
      %c0_14 = arith.constant 0 : index
      %c0_15 = arith.constant 0 : index
      %17 = vector.load %arg6[%c0_14, %c0_15] : memref<16x32xbf16, #tpu.memory_space<vmem>>, vector<16x32xbf16>
      tpu.vector_store %arg6[%c0_14, %c0_15], %16 {strides = array<i32>} : memref<16x32xbf16, #tpu.memory_space<vmem>>, vector<16x32xbf16>,
    } else {
    }
    return
  }
  func.func @transform_0(%arg0: i32, %arg1: i32, %arg2: i32) -> (i32, i32) {
    %c0_i32 = arith.constant 0 : i32
    return %arg0, %arg2 : i32, i32
  }
  func.func @transform_1(%arg0: i32, %arg1: i32, %arg2: i32) -> (i32, i32) {
    %c0_i32 = arith.constant 0 : i32
    return %arg2, %arg1 : i32, i32
  }
  func.func @transform_2(%arg0: i32, %arg1: i32, %arg2: i32) -> (i32, i32) {
    %c0_i32 = arith.constant 0 : i32
    %c0_i32_0 = arith.constant 0 : i32
    return %c0_i32, %arg1 : i32, i32
  }
  func.func @transform_3(%arg0: i32, %arg1: i32, %arg2: i32) -> (i32, i32) {
    %c0_i32 = arith.constant 0 : i32
    return %arg0, %arg1 : i32, i32
  }
}

module attributes {stable_mosaic.version = 11 : i64} {
  func.func @_add_layernorm_kernel(%arg0: i32, %arg1: memref<16x32xbf16, #tpu.memory_space<vmem>>, %arg2: memref<16x32xbf16, #tpu.memory_space<vmem>>, %arg3: memref<1x32xf32, #tpu.memory_space<vmem>>, %arg4: memref<1x32xf32, #tpu.memory_space<vmem>>, %arg5: memref<16x32xbf16, #tpu.memory_space<vmem>>) attributes {dimension_semantics = [#tpu.dimension_semantics<parallel>], iteration_bounds = array<i64: 1>, scalar_prefetch = 0 : i64, scratch_operands = 0 : i64, tpu.core_type = #tpu.core_type<tc>, window_params = [{transform_indices = @transform_0, window_bounds = array<i64: 16, 32>}, {transform_indices = @transform_1, window_bounds = array<i64: 16, 32>}, {pipeline_mode = #tpu.pipeline_mode<synchronous>, transform_indices = @transform_2, window_bounds = array<i64: 1, 32>}, {pipeline_mode = #tpu.pipeline_mode<synchronous>, transform_indices = @transform_3, window_bounds = array<i64: 1, 32>}, {transform_indices = @transform_4, window_bounds = array<i64: 16, 32>}]} {
    %c0 = arith.constant 0 : index
    %c0_0 = arith.constant 0 : index
    %0 = vector.load %arg1[%c0, %c0_0] : memref<16x32xbf16, #tpu.memory_space<vmem>>, vector<16x32xbf16>
    %1 = arith.extf %0 : vector<16x32xbf16> to vector<16x32xf32>
    %c0_1 = arith.constant 0 : index
    %c0_2 = arith.constant 0 : index
    %2 = vector.load %arg2[%c0_1, %c0_2] : memref<16x32xbf16, #tpu.memory_space<vmem>>, vector<16x32xbf16>
    %3 = arith.extf %2 : vector<16x32xbf16> to vector<16x32xf32>
    %4 = arith.addf %1, %3 : vector<16x32xf32>
    %cst = arith.constant dense<0.000000e+00> : vector<16xf32>
    %5 = vector.multi_reduction <add>, %4, %cst [1] : vector<16x32xf32> to vector<16xf32>
    %6 = vector.shape_cast %5 : vector<16xf32> to vector<16x1xf32>
    %cst_3 = arith.constant 3.200000e+01 : f32
    %7 = vector.broadcast %cst_3 : f32 to vector<16x1xf32>
    %8 = arith.divf %6, %7 : vector<16x1xf32>
    %9 = vector.broadcast %8 : vector<16x1xf32> to vector<16x32xf32>
    %10 = arith.subf %4, %9 : vector<16x32xf32>
    %11 = arith.mulf %10, %10 : vector<16x32xf32>
    %cst_4 = arith.constant dense<0.000000e+00> : vector<16xf32>
    %12 = vector.multi_reduction <add>, %11, %cst_4 [1] : vector<16x32xf32> to vector<16xf32>
    %13 = vector.shape_cast %12 : vector<16xf32> to vector<16x1xf32>
    %cst_5 = arith.constant 3.200000e+01 : f32
    %14 = vector.broadcast %cst_5 : f32 to vector<16x1xf32>
    %15 = arith.divf %13, %14 : vector<16x1xf32>
    %16 = vector.broadcast %8 : vector<16x1xf32> to vector<16x32xf32>
    %17 = arith.subf %4, %16 : vector<16x32xf32>
    %cst_6 = arith.constant 9.99999974E-6 : f32
    %18 = vector.broadcast %cst_6 : f32 to vector<16x1xf32>
    %19 = arith.addf %15, %18 : vector<16x1xf32>
    %20 = math.rsqrt %19 : vector<16x1xf32>
    %21 = vector.broadcast %20 : vector<16x1xf32> to vector<16x32xf32>
    %22 = arith.mulf %17, %21 : vector<16x32xf32>
    %c0_7 = arith.constant 0 : index
    %c0_8 = arith.constant 0 : index
    %23 = vector.load %arg3[%c0_7, %c0_8] : memref<1x32xf32, #tpu.memory_space<vmem>>, vector<1x32xf32>
    %24 = vector.broadcast %23 : vector<1x32xf32> to vector<16x32xf32>
    %25 = arith.mulf %22, %24 : vector<16x32xf32>
    %c0_9 = arith.constant 0 : index
    %c0_10 = arith.constant 0 : index
    %26 = vector.load %arg4[%c0_9, %c0_10] : memref<1x32xf32, #tpu.memory_space<vmem>>, vector<1x32xf32>
    %27 = vector.broadcast %26 : vector<1x32xf32> to vector<16x32xf32>
    %28 = arith.addf %25, %27 : vector<16x32xf32>
    %29 = arith.truncf %28 : vector<16x32xf32> to vector<16x32xbf16>
    %c0_11 = arith.constant 0 : index
    %c0_12 = arith.constant 0 : index
    %30 = vector.load %arg5[%c0_11, %c0_12] : memref<16x32xbf16, #tpu.memory_space<vmem>>, vector<16x32xbf16>
    tpu.vector_store %arg5[%c0_11, %c0_12], %29 {strides = array<i32>} : memref<16x32xbf16, #tpu.memory_space<vmem>>, vector<16x32xbf16>,
    return
  }
  func.func @transform_0(%arg0: i32) -> (i32, i32) {
    %c0_i32 = arith.constant 0 : i32
    %c0_i32_0 = arith.constant 0 : i32
    return %arg0, %c0_i32 : i32, i32
  }
  func.func @transform_1(%arg0: i32) -> (i32, i32) {
    %c0_i32 = arith.constant 0 : i32
    %c0_i32_0 = arith.constant 0 : i32
    return %arg0, %c0_i32 : i32, i32
  }
  func.func @transform_2(%arg0: i32) -> (i32, i32) {
    %c0_i32 = arith.constant 0 : i32
    %c0_i32_0 = arith.constant 0 : i32
    %c0_i32_1 = arith.constant 0 : i32
    return %c0_i32, %c0_i32_0 : i32, i32
  }
  func.func @transform_3(%arg0: i32) -> (i32, i32) {
    %c0_i32 = arith.constant 0 : i32
    %c0_i32_0 = arith.constant 0 : i32
    %c0_i32_1 = arith.constant 0 : i32
    return %c0_i32, %c0_i32_0 : i32, i32
  }
  func.func @transform_4(%arg0: i32) -> (i32, i32) {
    %c0_i32 = arith.constant 0 : i32
    %c0_i32_0 = arith.constant 0 : i32
    return %arg0, %c0_i32 : i32, i32
  }
}

module attributes {stable_mosaic.version = 11 : i64} {
  func.func @_attention_kernel(%arg0: i32, %arg1: memref<1x8x64xbf16, #tpu.memory_space<vmem>>, %arg2: memref<1x8x64xbf16, #tpu.memory_space<vmem>>, %arg3: memref<1x8x1xi32, #tpu.memory_space<vmem>>, %arg4: memref<1x1x8xi32, #tpu.memory_space<vmem>>, %arg5: memref<1x8x32xbf16, #tpu.memory_space<vmem>>) attributes {dimension_semantics = [#tpu.dimension_semantics<parallel>], iteration_bounds = array<i64: 2>, scalar_prefetch = 0 : i64, scratch_operands = 0 : i64, tpu.core_type = #tpu.core_type<tc>, window_params = [{transform_indices = @transform_0, window_bounds = array<i64: 1, 8, 64>}, {transform_indices = @transform_1, window_bounds = array<i64: 1, 8, 64>}, {transform_indices = @transform_2, window_bounds = array<i64: 1, 8, 1>}, {transform_indices = @transform_3, window_bounds = array<i64: 1, 1, 8>}, {transform_indices = @transform_4, window_bounds = array<i64: 1, 8, 32>}]} {
    %c0 = arith.constant 0 : index
    %c0_0 = arith.constant 0 : index
    %c0_1 = arith.constant 0 : index
    %0 = vector.load %arg1[%c0, %c0_0, %c0_1] : memref<1x8x64xbf16, #tpu.memory_space<vmem>>, vector<1x8x64xbf16>
    %1 = vector.shape_cast %0 : vector<1x8x64xbf16> to vector<8x64xbf16>
    %c0_2 = arith.constant 0 : index
    %c0_3 = arith.constant 0 : index
    %c0_4 = arith.constant 0 : index
    %2 = vector.load %arg2[%c0_2, %c0_3, %c0_4] : memref<1x8x64xbf16, #tpu.memory_space<vmem>>, vector<1x8x64xbf16>
    %3 = vector.shape_cast %2 : vector<1x8x64xbf16> to vector<8x64xbf16>
    %4 = vector.extract_strided_slice %1 {offsets = [0, 0], sizes = [8, 32], strides = [1, 1]} : vector<8x64xbf16> to vector<8x32xbf16>
    %5 = vector.extract_strided_slice %1 {offsets = [0, 32], sizes = [8, 32], strides = [1, 1]} : vector<8x64xbf16> to vector<8x32xbf16>
    %6 = arith.extf %5 : vector<8x32xbf16> to vector<8x32xf32>
    %7 = vector.extract_strided_slice %3 {offsets = [0, 0], sizes = [8, 32], strides = [1, 1]} : vector<8x64xbf16> to vector<8x32xbf16>
    %8 = vector.extract_strided_slice %3 {offsets = [0, 32], sizes = [8, 32], strides = [1, 1]} : vector<8x64xbf16> to vector<8x32xbf16>
    %c0_5 = arith.constant 0 : index
    %c0_6 = arith.constant 0 : index
    %c0_7 = arith.constant 0 : index
    %9 = vector.load %arg3[%c0_5, %c0_6, %c0_7] : memref<1x8x1xi32, #tpu.memory_space<vmem>>, vector<1x8x1xi32>
    %10 = vector.shape_cast %9 : vector<1x8x1xi32> to vector<8x1xi32>
    %c0_8 = arith.constant 0 : index
    %c0_9 = arith.constant 0 : index
    %c0_10 = arith.constant 0 : index
    %11 = vector.load %arg4[%c0_8, %c0_9, %c0_10] : memref<1x1x8xi32, #tpu.memory_space<vmem>>, vector<1x1x8xi32>
    %12 = vector.shape_cast %11 : vector<1x1x8xi32> to vector<1x8xi32>
    %13 = vector.broadcast %10 : vector<8x1xi32> to vector<8x8xi32>
    %14 = vector.broadcast %12 : vector<1x8xi32> to vector<8x8xi32>
    %15 = arith.muli %13, %14 : vector<8x8xi32>
    %c0_i32 = arith.constant 0 : i32
    %16 = vector.broadcast %c0_i32 : i32 to vector<8x8xi32>
    %17 = arith.cmpi sgt, %15, %16 : vector<8x8xi32>
    %18 = tpu.iota {dimensions = array<i32: 0>} : vector<8x8xi32>
    %19 = tpu.iota {dimensions = array<i32: 1>} : vector<8x8xi32>
    %20 = arith.cmpi sle, %19, %18 : vector<8x8xi32>
    %21 = arith.andi %17, %20 : vector<8x8xi1>
    %22 = vector.extract_strided_slice %4 {offsets = [0, 0], sizes = [8, 8], strides = [1, 1]} : vector<8x32xbf16> to vector<8x8xbf16>
    %23 = vector.extract_strided_slice %7 {offsets = [0, 0], sizes = [8, 8], strides = [1, 1]} : vector<8x32xbf16> to vector<8x8xbf16>
    %cst = arith.constant dense<0.000000e+00> : vector<8x8xf32>
    %24 = tpu.matmul %22, %23, %cst {dimension_numbers = #tpu.dot_dimension_numbers<[1], [1], [0], [0], [0, 0, 1, 0], [], []>} : vector<8x8xbf16>, vector<8x8xbf16>, vector<8x8xf32> -> vector<8x8xf32>
    %cst_11 = arith.constant 6.250000e-02 : f32
    %25 = vector.broadcast %cst_11 : f32 to vector<8x8xf32>
    %26 = arith.mulf %24, %25 : vector<8x8xf32>
    %cst_12 = arith.constant -1.000000e+20 : f32
    %27 = vector.broadcast %cst_12 : f32 to vector<8x8xf32>
    %28 = arith.select %21, %26, %27 : vector<8x8xi1>, vector<8x8xf32>
    %cst_13 = arith.constant dense<0xFF800000> : vector<8xf32>
    %29 = vector.multi_reduction <maximumf>, %28, %cst_13 [1] : vector<8x8xf32> to vector<8xf32>
    %30 = vector.shape_cast %29 : vector<8xf32> to vector<8x1xf32>
    %31 = vector.broadcast %30 : vector<8x1xf32> to vector<8x8xf32>
    %32 = arith.subf %28, %31 : vector<8x8xf32>
    %33 = math.exp %32 : vector<8x8xf32>
    %cst_14 = arith.constant dense<0.000000e+00> : vector<8xf32>
    %34 = vector.multi_reduction <add>, %33, %cst_14 [1] : vector<8x8xf32> to vector<8xf32>
    %35 = vector.shape_cast %34 : vector<8xf32> to vector<8x1xf32>
    %36 = tpu.reciprocal %35 {approx = true} : vector<8x1xf32> -> vector<8x1xf32>
    %37 = vector.broadcast %36 : vector<8x1xf32> to vector<8x8xf32>
    %38 = arith.mulf %33, %37 : vector<8x8xf32>
    %39 = arith.truncf %38 : vector<8x8xf32> to vector<8x8xbf16>
    %40 = vector.extract_strided_slice %8 {offsets = [0, 0], sizes = [8, 8], strides = [1, 1]} : vector<8x32xbf16> to vector<8x8xbf16>
    %cst_15 = arith.constant dense<0.000000e+00> : vector<8x8xf32>
    %41 = tpu.matmul %39, %40, %cst_15 {dimension_numbers = #tpu.dot_dimension_numbers<[1], [0], [0], [1], [0, 0, 1, 1], [], []>} : vector<8x8xbf16>, vector<8x8xbf16>, vector<8x8xf32> -> vector<8x8xf32>
    %42 = vector.extract_strided_slice %6 {offsets = [0, 0], sizes = [8, 8], strides = [1, 1]} : vector<8x32xf32> to vector<8x8xf32>
    %43 = arith.mulf %41, %42 : vector<8x8xf32>
    %44 = vector.extract_strided_slice %4 {offsets = [0, 8], sizes = [8, 8], strides = [1, 1]} : vector<8x32xbf16> to vector<8x8xbf16>
    %45 = vector.extract_strided_slice %7 {offsets = [0, 8], sizes = [8, 8], strides = [1, 1]} : vector<8x32xbf16> to vector<8x8xbf16>
    %cst_16 = arith.constant dense<0.000000e+00> : vector<8x8xf32>
    %46 = tpu.matmul %44, %45, %cst_16 {dimension_numbers = #tpu.dot_dimension_numbers<[1], [1], [0], [0], [0, 0, 1, 0], [], []>} : vector<8x8xbf16>, vector<8x8xbf16>, vector<8x8xf32> -> vector<8x8xf32>
    %cst_17 = arith.constant 6.250000e-02 : f32
    %47 = vector.broadcast %cst_17 : f32 to vector<8x8xf32>
    %48 = arith.mulf %46, %47 : vector<8x8xf32>
    %cst_18 = arith.constant -1.000000e+20 : f32
    %49 = vector.broadcast %cst_18 : f32 to vector<8x8xf32>
    %50 = arith.select %21, %48, %49 : vector<8x8xi1>, vector<8x8xf32>
    %cst_19 = arith.constant dense<0xFF800000> : vector<8xf32>
    %51 = vector.multi_reduction <maximumf>, %50, %cst_19 [1] : vector<8x8xf32> to vector<8xf32>
    %52 = vector.shape_cast %51 : vector<8xf32> to vector<8x1xf32>
    %53 = vector.broadcast %52 : vector<8x1xf32> to vector<8x8xf32>
    %54 = arith.subf %50, %53 : vector<8x8xf32>
    %55 = math.exp %54 : vector<8x8xf32>
    %cst_20 = arith.constant dense<0.000000e+00> : vector<8xf32>
    %56 = vector.multi_reduction <add>, %55, %cst_20 [1] : vector<8x8xf32> to vector<8xf32>
    %57 = vector.shape_cast %56 : vector<8xf32> to vector<8x1xf32>
    %58 = tpu.reciprocal %57 {approx = true} : vector<8x1xf32> -> vector<8x1xf32>
    %59 = vector.broadcast %58 : vector<8x1xf32> to vector<8x8xf32>
    %60 = arith.mulf %55, %59 : vector<8x8xf32>
    %61 = arith.truncf %60 : vector<8x8xf32> to vector<8x8xbf16>
    %62 = vector.extract_strided_slice %8 {offsets = [0, 8], sizes = [8, 8], strides = [1, 1]} : vector<8x32xbf16> to vector<8x8xbf16>
    %cst_21 = arith.constant dense<0.000000e+00> : vector<8x8xf32>
    %63 = tpu.matmul %61, %62, %cst_21 {dimension_numbers = #tpu.dot_dimension_numbers<[1], [0], [0], [1], [0, 0, 1, 1], [], []>} : vector<8x8xbf16>, vector<8x8xbf16>, vector<8x8xf32> -> vector<8x8xf32>
    %64 = vector.extract_strided_slice %6 {offsets = [0, 8], sizes = [8, 8], strides = [1, 1]} : vector<8x32xf32> to vector<8x8xf32>
    %65 = arith.mulf %63, %64 : vector<8x8xf32>
    %66 = vector.extract_strided_slice %4 {offsets = [0, 16], sizes = [8, 8], strides = [1, 1]} : vector<8x32xbf16> to vector<8x8xbf16>
    %67 = vector.extract_strided_slice %7 {offsets = [0, 16], sizes = [8, 8], strides = [1, 1]} : vector<8x32xbf16> to vector<8x8xbf16>
    %cst_22 = arith.constant dense<0.000000e+00> : vector<8x8xf32>
    %68 = tpu.matmul %66, %67, %cst_22 {dimension_numbers = #tpu.dot_dimension_numbers<[1], [1], [0], [0], [0, 0, 1, 0], [], []>} : vector<8x8xbf16>, vector<8x8xbf16>, vector<8x8xf32> -> vector<8x8xf32>
    %cst_23 = arith.constant 6.250000e-02 : f32
    %69 = vector.broadcast %cst_23 : f32 to vector<8x8xf32>
    %70 = arith.mulf %68, %69 : vector<8x8xf32>
    %cst_24 = arith.constant -1.000000e+20 : f32
    %71 = vector.broadcast %cst_24 : f32 to vector<8x8xf32>
    %72 = arith.select %21, %70, %71 : vector<8x8xi1>, vector<8x8xf32>
    %cst_25 = arith.constant dense<0xFF800000> : vector<8xf32>
    %73 = vector.multi_reduction <maximumf>, %72, %cst_25 [1] : vector<8x8xf32> to vector<8xf32>
    %74 = vector.shape_cast %73 : vector<8xf32> to vector<8x1xf32>
    %75 = vector.broadcast %74 : vector<8x1xf32> to vector<8x8xf32>
    %76 = arith.subf %72, %75 : vector<8x8xf32>
    %77 = math.exp %76 : vector<8x8xf32>
    %cst_26 = arith.constant dense<0.000000e+00> : vector<8xf32>
    %78 = vector.multi_reduction <add>, %77, %cst_26 [1] : vector<8x8xf32> to vector<8xf32>
    %79 = vector.shape_cast %78 : vector<8xf32> to vector<8x1xf32>
    %80 = tpu.reciprocal %79 {approx = true} : vector<8x1xf32> -> vector<8x1xf32>
    %81 = vector.broadcast %80 : vector<8x1xf32> to vector<8x8xf32>
    %82 = arith.mulf %77, %81 : vector<8x8xf32>
    %83 = arith.truncf %82 : vector<8x8xf32> to vector<8x8xbf16>
    %84 = vector.extract_strided_slice %8 {offsets = [0, 16], sizes = [8, 8], strides = [1, 1]} : vector<8x32xbf16> to vector<8x8xbf16>
    %cst_27 = arith.constant dense<0.000000e+00> : vector<8x8xf32>
    %85 = tpu.matmul %83, %84, %cst_27 {dimension_numbers = #tpu.dot_dimension_numbers<[1], [0], [0], [1], [0, 0, 1, 1], [], []>} : vector<8x8xbf16>, vector<8x8xbf16>, vector<8x8xf32> -> vector<8x8xf32>
    %86 = vector.extract_strided_slice %6 {offsets = [0, 16], sizes = [8, 8], strides = [1, 1]} : vector<8x32xf32> to vector<8x8xf32>
    %87 = arith.mulf %85, %86 : vector<8x8xf32>
    %88 = vector.extract_strided_slice %4 {offsets = [0, 24], sizes = [8, 8], strides = [1, 1]} : vector<8x32xbf16> to vector<8x8xbf16>
    %89 = vector.extract_strided_slice %7 {offsets = [0, 24], sizes = [8, 8], strides = [1, 1]} : vector<8x32xbf16> to vector<8x8xbf16>
    %cst_28 = arith.constant dense<0.000000e+00> : vector<8x8xf32>
    %90 = tpu.matmul %88, %89, %cst_28 {dimension_numbers = #tpu.dot_dimension_numbers<[1], [1], [0], [0], [0, 0, 1, 0], [], []>} : vector<8x8xbf16>, vector<8x8xbf16>, vector<8x8xf32> -> vector<8x8xf32>
    %cst_29 = arith.constant 6.250000e-02 : f32
    %91 = vector.broadcast %cst_29 : f32 to vector<8x8xf32>
    %92 = arith.mulf %90, %91 : vector<8x8xf32>
    %cst_30 = arith.constant -1.000000e+20 : f32
    %93 = vector.broadcast %cst_30 : f32 to vector<8x8xf32>
    %94 = arith.select %21, %92, %93 : vector<8x8xi1>, vector<8x8xf32>
    %cst_31 = arith.constant dense<0xFF800000> : vector<8xf32>
    %95 = vector.multi_reduction <maximumf>, %94, %cst_31 [1] : vector<8x8xf32> to vector<8xf32>
    %96 = vector.shape_cast %95 : vector<8xf32> to vector<8x1xf32>
    %97 = vector.broadcast %96 : vector<8x1xf32> to vector<8x8xf32>
    %98 = arith.subf %94, %97 : vector<8x8xf32>
    %99 = math.exp %98 : vector<8x8xf32>
    %cst_32 = arith.constant dense<0.000000e+00> : vector<8xf32>
    %100 = vector.multi_reduction <add>, %99, %cst_32 [1] : vector<8x8xf32> to vector<8xf32>
    %101 = vector.shape_cast %100 : vector<8xf32> to vector<8x1xf32>
    %102 = tpu.reciprocal %101 {approx = true} : vector<8x1xf32> -> vector<8x1xf32>
    %103 = vector.broadcast %102 : vector<8x1xf32> to vector<8x8xf32>
    %104 = arith.mulf %99, %103 : vector<8x8xf32>
    %105 = arith.truncf %104 : vector<8x8xf32> to vector<8x8xbf16>
    %106 = vector.extract_strided_slice %8 {offsets = [0, 24], sizes = [8, 8], strides = [1, 1]} : vector<8x32xbf16> to vector<8x8xbf16>
    %cst_33 = arith.constant dense<0.000000e+00> : vector<8x8xf32>
    %107 = tpu.matmul %105, %106, %cst_33 {dimension_numbers = #tpu.dot_dimension_numbers<[1], [0], [0], [1], [0, 0, 1, 1], [], []>} : vector<8x8xbf16>, vector<8x8xbf16>, vector<8x8xf32> -> vector<8x8xf32>
    %108 = vector.extract_strided_slice %6 {offsets = [0, 24], sizes = [8, 8], strides = [1, 1]} : vector<8x32xf32> to vector<8x8xf32>
    %109 = arith.mulf %107, %108 : vector<8x8xf32>
    %110 = tpu.concatenate %43, %65, %87, %109 in 1 : vector<8x8xf32>, vector<8x8xf32>, vector<8x8xf32>, vector<8x8xf32> -> vector<8x32xf32>
    %111 = arith.truncf %110 : vector<8x32xf32> to vector<8x32xbf16>
    %c0_34 = arith.constant 0 : index
    %c0_35 = arith.constant 0 : index
    %c0_36 = arith.constant 0 : index
    %112 = vector.load %arg5[%c0_34, %c0_35, %c0_36] : memref<1x8x32xbf16, #tpu.memory_space<vmem>>, vector<1x8x32xbf16>
    %113 = vector.shape_cast %112 : vector<1x8x32xbf16> to vector<8x32xbf16>
    %114 = vector.shape_cast %111 : vector<8x32xbf16> to vector<1x8x32xbf16>
    tpu.vector_store %arg5[%c0_34, %c0_35, %c0_36], %114 {strides = array<i32>} : memref<1x8x32xbf16, #tpu.memory_space<vmem>>, vector<1x8x32xbf16>,
    return
  }
  func.func @transform_0(%arg0: i32) -> (i32, i32, i32) {
    %c0_i32 = arith.constant 0 : i32
    %c0_i32_0 = arith.constant 0 : i32
    %c0_i32_1 = arith.constant 0 : i32
    return %arg0, %c0_i32, %c0_i32_0 : i32, i32, i32
  }
  func.func @transform_1(%arg0: i32) -> (i32, i32, i32) {
    %c0_i32 = arith.constant 0 : i32
    %c0_i32_0 = arith.constant 0 : i32
    %c0_i32_1 = arith.constant 0 : i32
    return %arg0, %c0_i32, %c0_i32_0 : i32, i32, i32
  }
  func.func @transform_2(%arg0: i32) -> (i32, i32, i32) {
    %c0_i32 = arith.constant 0 : i32
    %c0_i32_0 = arith.constant 0 : i32
    %c0_i32_1 = arith.constant 0 : i32
    return %arg0, %c0_i32, %c0_i32_0 : i32, i32, i32
  }
  func.func @transform_3(%arg0: i32) -> (i32, i32, i32) {
    %c0_i32 = arith.constant 0 : i32
    %c0_i32_0 = arith.constant 0 : i32
    %c0_i32_1 = arith.constant 0 : i32
    return %arg0, %c0_i32, %c0_i32_0 : i32, i32, i32
  }
  func.func @transform_4(%arg0: i32) -> (i32, i32, i32) {
    %c0_i32 = arith.constant 0 : i32
    %c0_i32_0 = arith.constant 0 : i32
    %c0_i32_1 = arith.constant 0 : i32
    return %arg0, %c0_i32, %c0_i32_0 : i32, i32, i32
  }
}

module attributes {stable_mosaic.version = 11 : i64} {
  func.func @_linear_kernel(%arg0: i32, %arg1: i32, %arg2: i32, %arg3: memref<16x32xbf16, #tpu.memory_space<vmem>>, %arg4: memref<32x128xbf16, #tpu.memory_space<vmem>>, %arg5: memref<1x128xf32, #tpu.memory_space<vmem>>, %arg6: memref<16x128xbf16, #tpu.memory_space<vmem>>, %arg7: memref<16x128xf32, #tpu.memory_space<vmem>>) attributes {dimension_semantics = [#tpu.dimension_semantics<parallel>, #tpu.dimension_semantics<parallel>, #tpu.dimension_semantics<arbitrary>], iteration_bounds = array<i64: 1, 1, 1>, scalar_prefetch = 0 : i64, scratch_operands = 1 : i64, tpu.core_type = #tpu.core_type<tc>, window_params = [{transform_indices = @transform_0, window_bounds = array<i64: 16, 32>}, {transform_indices = @transform_1, window_bounds = array<i64: 32, 128>}, {transform_indices = @transform_2, window_bounds = array<i64: 1, 128>}, {transform_indices = @transform_3, window_bounds = array<i64: 16, 128>}]} {
    %c0_i32 = arith.constant 0 : i32
    %0 = arith.cmpi eq, %arg2, %c0_i32 : i32
    %1 = arith.extui %0 : i1 to i32
    %c0_i32_0 = arith.constant 0 : i32
    %2 = arith.cmpi ne, %1, %c0_i32_0 : i32
    scf.if %2 {
      %cst_10 = arith.constant 0.000000e+00 : f32
      %12 = vector.broadcast %cst_10 : f32 to vector<16x128xf32>
      %c0_11 = arith.constant 0 : index
      %c0_12 = arith.constant 0 : index
      %13 = vector.load %arg7[%c0_11, %c0_12] : memref<16x128xf32, #tpu.memory_space<vmem>>, vector<16x128xf32>
      tpu.vector_store %arg7[%c0_11, %c0_12], %12 {strides = array<i32>} : memref<16x128xf32, #tpu.memory_space<vmem>>, vector<16x128xf32>,
    } else {
    }
    %c0 = arith.constant 0 : index
    %c0_1 = arith.constant 0 : index
    %3 = vector.load %arg7[%c0, %c0_1] : memref<16x128xf32, #tpu.memory_space<vmem>>, vector<16x128xf32>
    %c0_2 = arith.constant 0 : index
    %c0_3 = arith.constant 0 : index
    %4 = vector.load %arg3[%c0_2, %c0_3] : memref<16x32xbf16, #tpu.memory_space<vmem>>, vector<16x32xbf16>
    %c0_4 = arith.constant 0 : index
    %c0_5 = arith.constant 0 : index
    %5 = vector.load %arg4[%c0_4, %c0_5] : memref<32x128xbf16, #tpu.memory_space<vmem>>, vector<32x128xbf16>
    %cst = arith.constant dense<0.000000e+00> : vector<16x128xf32>
    %6 = tpu.matmul %4, %5, %cst {dimension_numbers = #tpu.dot_dimension_numbers<[1], [0], [0], [1], [0, 0, 1, 1], [], []>} : vector<16x32xbf16>, vector<32x128xbf16>, vector<16x128xf32> -> vector<16x128xf32>
    %7 = arith.addf %3, %6 : vector<16x128xf32>
    %c0_6 = arith.constant 0 : index
    %c0_7 = arith.constant 0 : index
    %8 = vector.load %arg7[%c0_6, %c0_7] : memref<16x128xf32, #tpu.memory_space<vmem>>, vector<16x128xf32>
    tpu.vector_store %arg7[%c0_6, %c0_7], %7 {strides = array<i32>} : memref<16x128xf32, #tpu.memory_space<vmem>>, vector<16x128xf32>,
    %c0_i32_8 = arith.constant 0 : i32
    %9 = arith.cmpi eq, %arg2, %c0_i32_8 : i32
    %10 = arith.extui %9 : i1 to i32
    %c0_i32_9 = arith.constant 0 : i32
    %11 = arith.cmpi ne, %10, %c0_i32_9 : i32
    scf.if %11 {
      %c0_10 = arith.constant 0 : index
      %c0_11 = arith.constant 0 : index
      %12 = vector.load %arg7[%c0_10, %c0_11] : memref<16x128xf32, #tpu.memory_space<vmem>>, vector<16x128xf32>
      %c0_12 = arith.constant 0 : index
      %c0_13 = arith.constant 0 : index
      %13 = vector.load %arg5[%c0_12, %c0_13] : memref<1x128xf32, #tpu.memory_space<vmem>>, vector<1x128xf32>
      %14 = vector.broadcast %13 : vector<1x128xf32> to vector<16x128xf32>
      %15 = arith.addf %12, %14 : vector<16x128xf32>
      %cst_14 = arith.constant 0.000000e+00 : f32
      %16 = vector.broadcast %cst_14 : f32 to vector<16x128xf32>
      %17 = arith.maximumf %15, %16 : vector<16x128xf32>
      %18 = arith.truncf %17 : vector<16x128xf32> to vector<16x128xbf16>
      %c0_15 = arith.constant 0 : index
      %c0_16 = arith.constant 0 : index
      %19 = vector.load %arg6[%c0_15, %c0_16] : memref<16x128xbf16, #tpu.memory_space<vmem>>, vector<16x128xbf16>
      tpu.vector_store %arg6[%c0_15, %c0_16], %18 {strides = array<i32>} : memref<16x128xbf16, #tpu.memory_space<vmem>>, vector<16x128xbf16>,
    } else {
    }
    return
  }
  func.func @transform_0(%arg0: i32, %arg1: i32, %arg2: i32) -> (i32, i32) {
    %c0_i32 = arith.constant 0 : i32
    return %arg0, %arg2 : i32, i32
  }
  func.func @transform_1(%arg0: i32, %arg1: i32, %arg2: i32) -> (i32, i32) {
    %c0_i32 = arith.constant 0 : i32
    return %arg2, %arg1 : i32, i32
  }
  func.func @transform_2(%arg0: i32, %arg1: i32, %arg2: i32) -> (i32, i32) {
    %c0_i32 = arith.constant 0 : i32
    %c0_i32_0 = arith.constant 0 : i32
    return %c0_i32, %arg1 : i32, i32
  }
  func.func @transform_3(%arg0: i32, %arg1: i32, %arg2: i32) -> (i32, i32) {
    %c0_i32 = arith.constant 0 : i32
    return %arg0, %arg1 : i32, i32
  }
}

module attributes {stable_mosaic.version = 11 : i64} {
  func.func @_linear_kernel(%arg0: i32, %arg1: i32, %arg2: i32, %arg3: memref<16x128xbf16, #tpu.memory_space<vmem>>, %arg4: memref<128x32xbf16, #tpu.memory_space<vmem>>, %arg5: memref<1x32xf32, #tpu.memory_space<vmem>>, %arg6: memref<16x32xbf16, #tpu.memory_space<vmem>>, %arg7: memref<16x32xf32, #tpu.memory_space<vmem>>) attributes {dimension_semantics = [#tpu.dimension_semantics<parallel>, #tpu.dimension_semantics<parallel>, #tpu.dimension_semantics<arbitrary>], iteration_bounds = array<i64: 1, 1, 1>, scalar_prefetch = 0 : i64, scratch_operands = 1 : i64, tpu.core_type = #tpu.core_type<tc>, window_params = [{transform_indices = @transform_0, window_bounds = array<i64: 16, 128>}, {transform_indices = @transform_1, window_bounds = array<i64: 128, 32>}, {transform_indices = @transform_2, window_bounds = array<i64: 1, 32>}, {transform_indices = @transform_3, window_bounds = array<i64: 16, 32>}]} {
    %c0_i32 = arith.constant 0 : i32
    %0 = arith.cmpi eq, %arg2, %c0_i32 : i32
    %1 = arith.extui %0 : i1 to i32
    %c0_i32_0 = arith.constant 0 : i32
    %2 = arith.cmpi ne, %1, %c0_i32_0 : i32
    scf.if %2 {
      %cst_10 = arith.constant 0.000000e+00 : f32
      %12 = vector.broadcast %cst_10 : f32 to vector<16x32xf32>
      %c0_11 = arith.constant 0 : index
      %c0_12 = arith.constant 0 : index
      %13 = vector.load %arg7[%c0_11, %c0_12] : memref<16x32xf32, #tpu.memory_space<vmem>>, vector<16x32xf32>
      tpu.vector_store %arg7[%c0_11, %c0_12], %12 {strides = array<i32>} : memref<16x32xf32, #tpu.memory_space<vmem>>, vector<16x32xf32>,
    } else {
    }
    %c0 = arith.constant 0 : index
    %c0_1 = arith.constant 0 : index
    %3 = vector.load %arg7[%c0, %c0_1] : memref<16x32xf32, #tpu.memory_space<vmem>>, vector<16x32xf32>
    %c0_2 = arith.constant 0 : index
    %c0_3 = arith.constant 0 : index
    %4 = vector.load %arg3[%c0_2, %c0_3] : memref<16x128xbf16, #tpu.memory_space<vmem>>, vector<16x128xbf16>
    %c0_4 = arith.constant 0 : index
    %c0_5 = arith.constant 0 : index
    %5 = vector.load %arg4[%c0_4, %c0_5] : memref<128x32xbf16, #tpu.memory_space<vmem>>, vector<128x32xbf16>
    %cst = arith.constant dense<0.000000e+00> : vector<16x32xf32>
    %6 = tpu.matmul %4, %5, %cst {dimension_numbers = #tpu.dot_dimension_numbers<[1], [0], [0], [1], [0, 0, 1, 1], [], []>} : vector<16x128xbf16>, vector<128x32xbf16>, vector<16x32xf32> -> vector<16x32xf32>
    %7 = arith.addf %3, %6 : vector<16x32xf32>
    %c0_6 = arith.constant 0 : index
    %c0_7 = arith.constant 0 : index
    %8 = vector.load %arg7[%c0_6, %c0_7] : memref<16x32xf32, #tpu.memory_space<vmem>>, vector<16x32xf32>
    tpu.vector_store %arg7[%c0_6, %c0_7], %7 {strides = array<i32>} : memref<16x32xf32, #tpu.memory_space<vmem>>, vector<16x32xf32>,
    %c0_i32_8 = arith.constant 0 : i32
    %9 = arith.cmpi eq, %arg2, %c0_i32_8 : i32
    %10 = arith.extui %9 : i1 to i32
    %c0_i32_9 = arith.constant 0 : i32
    %11 = arith.cmpi ne, %10, %c0_i32_9 : i32
    scf.if %11 {
      %c0_10 = arith.constant 0 : index
      %c0_11 = arith.constant 0 : index
      %12 = vector.load %arg7[%c0_10, %c0_11] : memref<16x32xf32, #tpu.memory_space<vmem>>, vector<16x32xf32>
      %c0_12 = arith.constant 0 : index
      %c0_13 = arith.constant 0 : index
      %13 = vector.load %arg5[%c0_12, %c0_13] : memref<1x32xf32, #tpu.memory_space<vmem>>, vector<1x32xf32>
      %14 = vector.broadcast %13 : vector<1x32xf32> to vector<16x32xf32>
      %15 = arith.addf %12, %14 : vector<16x32xf32>
      %16 = arith.truncf %15 : vector<16x32xf32> to vector<16x32xbf16>
      %c0_14 = arith.constant 0 : index
      %c0_15 = arith.constant 0 : index
      %17 = vector.load %arg6[%c0_14, %c0_15] : memref<16x32xbf16, #tpu.memory_space<vmem>>, vector<16x32xbf16>
      tpu.vector_store %arg6[%c0_14, %c0_15], %16 {strides = array<i32>} : memref<16x32xbf16, #tpu.memory_space<vmem>>, vector<16x32xbf16>,
    } else {
    }
    return
  }
  func.func @transform_0(%arg0: i32, %arg1: i32, %arg2: i32) -> (i32, i32) {
    %c0_i32 = arith.constant 0 : i32
    return %arg0, %arg2 : i32, i32
  }
  func.func @transform_1(%arg0: i32, %arg1: i32, %arg2: i32) -> (i32, i32) {
    %c0_i32 = arith.constant 0 : i32
    return %arg2, %arg1 : i32, i32
  }
  func.func @transform_2(%arg0: i32, %arg1: i32, %arg2: i32) -> (i32, i32) {
    %c0_i32 = arith.constant 0 : i32
    %c0_i32_0 = arith.constant 0 : i32
    return %c0_i32, %arg1 : i32, i32
  }
  func.func @transform_3(%arg0: i32, %arg1: i32, %arg2: i32) -> (i32, i32) {
    %c0_i32 = arith.constant 0 : i32
    return %arg0, %arg1 : i32, i32
  }
}

module attributes {stable_mosaic.version = 11 : i64} {
  func.func @_attention_kernel(%arg0: i32, %arg1: memref<1x8x64xbf16, #tpu.memory_space<vmem>>, %arg2: memref<1x8x64xbf16, #tpu.memory_space<vmem>>, %arg3: memref<1x8x1xi32, #tpu.memory_space<vmem>>, %arg4: memref<1x1x8xi32, #tpu.memory_space<vmem>>, %arg5: memref<1x8x32xbf16, #tpu.memory_space<vmem>>) attributes {dimension_semantics = [#tpu.dimension_semantics<parallel>], iteration_bounds = array<i64: 2>, scalar_prefetch = 0 : i64, scratch_operands = 0 : i64, tpu.core_type = #tpu.core_type<tc>, window_params = [{transform_indices = @transform_0, window_bounds = array<i64: 1, 8, 64>}, {transform_indices = @transform_1, window_bounds = array<i64: 1, 8, 64>}, {transform_indices = @transform_2, window_bounds = array<i64: 1, 8, 1>}, {transform_indices = @transform_3, window_bounds = array<i64: 1, 1, 8>}, {transform_indices = @transform_4, window_bounds = array<i64: 1, 8, 32>}]} {
    %c0 = arith.constant 0 : index
    %c0_0 = arith.constant 0 : index
    %c0_1 = arith.constant 0 : index
    %0 = vector.load %arg1[%c0, %c0_0, %c0_1] : memref<1x8x64xbf16, #tpu.memory_space<vmem>>, vector<1x8x64xbf16>
    %1 = vector.shape_cast %0 : vector<1x8x64xbf16> to vector<8x64xbf16>
    %c0_2 = arith.constant 0 : index
    %c0_3 = arith.constant 0 : index
    %c0_4 = arith.constant 0 : index
    %2 = vector.load %arg2[%c0_2, %c0_3, %c0_4] : memref<1x8x64xbf16, #tpu.memory_space<vmem>>, vector<1x8x64xbf16>
    %3 = vector.shape_cast %2 : vector<1x8x64xbf16> to vector<8x64xbf16>
    %4 = vector.extract_strided_slice %1 {offsets = [0, 0], sizes = [8, 32], strides = [1, 1]} : vector<8x64xbf16> to vector<8x32xbf16>
    %5 = vector.extract_strided_slice %1 {offsets = [0, 32], sizes = [8, 32], strides = [1, 1]} : vector<8x64xbf16> to vector<8x32xbf16>
    %6 = arith.extf %5 : vector<8x32xbf16> to vector<8x32xf32>
    %7 = vector.extract_strided_slice %3 {offsets = [0, 0], sizes = [8, 32], strides = [1, 1]} : vector<8x64xbf16> to vector<8x32xbf16>
    %8 = vector.extract_strided_slice %3 {offsets = [0, 32], sizes = [8, 32], strides = [1, 1]} : vector<8x64xbf16> to vector<8x32xbf16>
    %c0_5 = arith.constant 0 : index
    %c0_6 = arith.constant 0 : index
    %c0_7 = arith.constant 0 : index
    %9 = vector.load %arg3[%c0_5, %c0_6, %c0_7] : memref<1x8x1xi32, #tpu.memory_space<vmem>>, vector<1x8x1xi32>
    %10 = vector.shape_cast %9 : vector<1x8x1xi32> to vector<8x1xi32>
    %c0_8 = arith.constant 0 : index
    %c0_9 = arith.constant 0 : index
    %c0_10 = arith.constant 0 : index
    %11 = vector.load %arg4[%c0_8, %c0_9, %c0_10] : memref<1x1x8xi32, #tpu.memory_space<vmem>>, vector<1x1x8xi32>
    %12 = vector.shape_cast %11 : vector<1x1x8xi32> to vector<1x8xi32>
    %13 = vector.broadcast %10 : vector<8x1xi32> to vector<8x8xi32>
    %14 = vector.broadcast %12 : vector<1x8xi32> to vector<8x8xi32>
    %15 = arith.muli %13, %14 : vector<8x8xi32>
    %c0_i32 = arith.constant 0 : i32
    %16 = vector.broadcast %c0_i32 : i32 to vector<8x8xi32>
    %17 = arith.cmpi sgt, %15, %16 : vector<8x8xi32>
    %18 = vector.extract_strided_slice %4 {offsets = [0, 0], sizes = [8, 8], strides = [1, 1]} : vector<8x32xbf16> to vector<8x8xbf16>
    %19 = vector.extract_strided_slice %7 {offsets = [0, 0], sizes = [8, 8], strides = [1, 1]} : vector<8x32xbf16> to vector<8x8xbf16>
    %cst = arith.constant dense<0.000000e+00> : vector<8x8xf32>
    %20 = tpu.matmul %18, %19, %cst {dimension_numbers = #tpu.dot_dimension_numbers<[1], [1], [0], [0], [0, 0, 1, 0], [], []>} : vector<8x8xbf16>, vector<8x8xbf16>, vector<8x8xf32> -> vector<8x8xf32>
    %cst_11 = arith.constant 6.250000e-02 : f32
    %21 = vector.broadcast %cst_11 : f32 to vector<8x8xf32>
    %22 = arith.mulf %20, %21 : vector<8x8xf32>
    %cst_12 = arith.constant -1.000000e+20 : f32
    %23 = vector.broadcast %cst_12 : f32 to vector<8x8xf32>
    %24 = arith.select %17, %22, %23 : vector<8x8xi1>, vector<8x8xf32>
    %cst_13 = arith.constant dense<0xFF800000> : vector<8xf32>
    %25 = vector.multi_reduction <maximumf>, %24, %cst_13 [1] : vector<8x8xf32> to vector<8xf32>
    %26 = vector.shape_cast %25 : vector<8xf32> to vector<8x1xf32>
    %27 = vector.broadcast %26 : vector<8x1xf32> to vector<8x8xf32>
    %28 = arith.subf %24, %27 : vector<8x8xf32>
    %29 = math.exp %28 : vector<8x8xf32>
    %cst_14 = arith.constant dense<0.000000e+00> : vector<8xf32>
    %30 = vector.multi_reduction <add>, %29, %cst_14 [1] : vector<8x8xf32> to vector<8xf32>
    %31 = vector.shape_cast %30 : vector<8xf32> to vector<8x1xf32>
    %32 = tpu.reciprocal %31 {approx = true} : vector<8x1xf32> -> vector<8x1xf32>
    %33 = vector.broadcast %32 : vector<8x1xf32> to vector<8x8xf32>
    %34 = arith.mulf %29, %33 : vector<8x8xf32>
    %35 = arith.truncf %34 : vector<8x8xf32> to vector<8x8xbf16>
    %36 = vector.extract_strided_slice %8 {offsets = [0, 0], sizes = [8, 8], strides = [1, 1]} : vector<8x32xbf16> to vector<8x8xbf16>
    %cst_15 = arith.constant dense<0.000000e+00> : vector<8x8xf32>
    %37 = tpu.matmul %35, %36, %cst_15 {dimension_numbers = #tpu.dot_dimension_numbers<[1], [0], [0], [1], [0, 0, 1, 1], [], []>} : vector<8x8xbf16>, vector<8x8xbf16>, vector<8x8xf32> -> vector<8x8xf32>
    %38 = vector.extract_strided_slice %6 {offsets = [0, 0], sizes = [8, 8], strides = [1, 1]} : vector<8x32xf32> to vector<8x8xf32>
    %39 = arith.mulf %37, %38 : vector<8x8xf32>
    %40 = vector.extract_strided_slice %4 {offsets = [0, 8], sizes = [8, 8], strides = [1, 1]} : vector<8x32xbf16> to vector<8x8xbf16>
    %41 = vector.extract_strided_slice %7 {offsets = [0, 8], sizes = [8, 8], strides = [1, 1]} : vector<8x32xbf16> to vector<8x8xbf16>
    %cst_16 = arith.constant dense<0.000000e+00> : vector<8x8xf32>
    %42 = tpu.matmul %40, %41, %cst_16 {dimension_numbers = #tpu.dot_dimension_numbers<[1], [1], [0], [0], [0, 0, 1, 0], [], []>} : vector<8x8xbf16>, vector<8x8xbf16>, vector<8x8xf32> -> vector<8x8xf32>
    %cst_17 = arith.constant 6.250000e-02 : f32
    %43 = vector.broadcast %cst_17 : f32 to vector<8x8xf32>
    %44 = arith.mulf %42, %43 : vector<8x8xf32>
    %cst_18 = arith.constant -1.000000e+20 : f32
    %45 = vector.broadcast %cst_18 : f32 to vector<8x8xf32>
    %46 = arith.select %17, %44, %45 : vector<8x8xi1>, vector<8x8xf32>
    %cst_19 = arith.constant dense<0xFF800000> : vector<8xf32>
    %47 = vector.multi_reduction <maximumf>, %46, %cst_19 [1] : vector<8x8xf32> to vector<8xf32>
    %48 = vector.shape_cast %47 : vector<8xf32> to vector<8x1xf32>
    %49 = vector.broadcast %48 : vector<8x1xf32> to vector<8x8xf32>
    %50 = arith.subf %46, %49 : vector<8x8xf32>
    %51 = math.exp %50 : vector<8x8xf32>
    %cst_20 = arith.constant dense<0.000000e+00> : vector<8xf32>
    %52 = vector.multi_reduction <add>, %51, %cst_20 [1] : vector<8x8xf32> to vector<8xf32>
    %53 = vector.shape_cast %52 : vector<8xf32> to vector<8x1xf32>
    %54 = tpu.reciprocal %53 {approx = true} : vector<8x1xf32> -> vector<8x1xf32>
    %55 = vector.broadcast %54 : vector<8x1xf32> to vector<8x8xf32>
    %56 = arith.mulf %51, %55 : vector<8x8xf32>
    %57 = arith.truncf %56 : vector<8x8xf32> to vector<8x8xbf16>
    %58 = vector.extract_strided_slice %8 {offsets = [0, 8], sizes = [8, 8], strides = [1, 1]} : vector<8x32xbf16> to vector<8x8xbf16>
    %cst_21 = arith.constant dense<0.000000e+00> : vector<8x8xf32>
    %59 = tpu.matmul %57, %58, %cst_21 {dimension_numbers = #tpu.dot_dimension_numbers<[1], [0], [0], [1], [0, 0, 1, 1], [], []>} : vector<8x8xbf16>, vector<8x8xbf16>, vector<8x8xf32> -> vector<8x8xf32>
    %60 = vector.extract_strided_slice %6 {offsets = [0, 8], sizes = [8, 8], strides = [1, 1]} : vector<8x32xf32> to vector<8x8xf32>
    %61 = arith.mulf %59, %60 : vector<8x8xf32>
    %62 = vector.extract_strided_slice %4 {offsets = [0, 16], sizes = [8, 8], strides = [1, 1]} : vector<8x32xbf16> to vector<8x8xbf16>
    %63 = vector.extract_strided_slice %7 {offsets = [0, 16], sizes = [8, 8], strides = [1, 1]} : vector<8x32xbf16> to vector<8x8xbf16>
    %cst_22 = arith.constant dense<0.000000e+00> : vector<8x8xf32>
    %64 = tpu.matmul %62, %63, %cst_22 {dimension_numbers = #tpu.dot_dimension_numbers<[1], [1], [0], [0], [0, 0, 1, 0], [], []>} : vector<8x8xbf16>, vector<8x8xbf16>, vector<8x8xf32> -> vector<8x8xf32>
    %cst_23 = arith.constant 6.250000e-02 : f32
    %65 = vector.broadcast %cst_23 : f32 to vector<8x8xf32>
    %66 = arith.mulf %64, %65 : vector<8x8xf32>
    %cst_24 = arith.constant -1.000000e+20 : f32
    %67 = vector.broadcast %cst_24 : f32 to vector<8x8xf32>
    %68 = arith.select %17, %66, %67 : vector<8x8xi1>, vector<8x8xf32>
    %cst_25 = arith.constant dense<0xFF800000> : vector<8xf32>
    %69 = vector.multi_reduction <maximumf>, %68, %cst_25 [1] : vector<8x8xf32> to vector<8xf32>
    %70 = vector.shape_cast %69 : vector<8xf32> to vector<8x1xf32>
    %71 = vector.broadcast %70 : vector<8x1xf32> to vector<8x8xf32>
    %72 = arith.subf %68, %71 : vector<8x8xf32>
    %73 = math.exp %72 : vector<8x8xf32>
    %cst_26 = arith.constant dense<0.000000e+00> : vector<8xf32>
    %74 = vector.multi_reduction <add>, %73, %cst_26 [1] : vector<8x8xf32> to vector<8xf32>
    %75 = vector.shape_cast %74 : vector<8xf32> to vector<8x1xf32>
    %76 = tpu.reciprocal %75 {approx = true} : vector<8x1xf32> -> vector<8x1xf32>
    %77 = vector.broadcast %76 : vector<8x1xf32> to vector<8x8xf32>
    %78 = arith.mulf %73, %77 : vector<8x8xf32>
    %79 = arith.truncf %78 : vector<8x8xf32> to vector<8x8xbf16>
    %80 = vector.extract_strided_slice %8 {offsets = [0, 16], sizes = [8, 8], strides = [1, 1]} : vector<8x32xbf16> to vector<8x8xbf16>
    %cst_27 = arith.constant dense<0.000000e+00> : vector<8x8xf32>
    %81 = tpu.matmul %79, %80, %cst_27 {dimension_numbers = #tpu.dot_dimension_numbers<[1], [0], [0], [1], [0, 0, 1, 1], [], []>} : vector<8x8xbf16>, vector<8x8xbf16>, vector<8x8xf32> -> vector<8x8xf32>
    %82 = vector.extract_strided_slice %6 {offsets = [0, 16], sizes = [8, 8], strides = [1, 1]} : vector<8x32xf32> to vector<8x8xf32>
    %83 = arith.mulf %81, %82 : vector<8x8xf32>
    %84 = vector.extract_strided_slice %4 {offsets = [0, 24], sizes = [8, 8], strides = [1, 1]} : vector<8x32xbf16> to vector<8x8xbf16>
    %85 = vector.extract_strided_slice %7 {offsets = [0, 24], sizes = [8, 8], strides = [1, 1]} : vector<8x32xbf16> to vector<8x8xbf16>
    %cst_28 = arith.constant dense<0.000000e+00> : vector<8x8xf32>
    %86 = tpu.matmul %84, %85, %cst_28 {dimension_numbers = #tpu.dot_dimension_numbers<[1], [1], [0], [0], [0, 0, 1, 0], [], []>} : vector<8x8xbf16>, vector<8x8xbf16>, vector<8x8xf32> -> vector<8x8xf32>
    %cst_29 = arith.constant 6.250000e-02 : f32
    %87 = vector.broadcast %cst_29 : f32 to vector<8x8xf32>
    %88 = arith.mulf %86, %87 : vector<8x8xf32>
    %cst_30 = arith.constant -1.000000e+20 : f32
    %89 = vector.broadcast %cst_30 : f32 to vector<8x8xf32>
    %90 = arith.select %17, %88, %89 : vector<8x8xi1>, vector<8x8xf32>
    %cst_31 = arith.constant dense<0xFF800000> : vector<8xf32>
    %91 = vector.multi_reduction <maximumf>, %90, %cst_31 [1] : vector<8x8xf32> to vector<8xf32>
    %92 = vector.shape_cast %91 : vector<8xf32> to vector<8x1xf32>
    %93 = vector.broadcast %92 : vector<8x1xf32> to vector<8x8xf32>
    %94 = arith.subf %90, %93 : vector<8x8xf32>
    %95 = math.exp %94 : vector<8x8xf32>
    %cst_32 = arith.constant dense<0.000000e+00> : vector<8xf32>
    %96 = vector.multi_reduction <add>, %95, %cst_32 [1] : vector<8x8xf32> to vector<8xf32>
    %97 = vector.shape_cast %96 : vector<8xf32> to vector<8x1xf32>
    %98 = tpu.reciprocal %97 {approx = true} : vector<8x1xf32> -> vector<8x1xf32>
    %99 = vector.broadcast %98 : vector<8x1xf32> to vector<8x8xf32>
    %100 = arith.mulf %95, %99 : vector<8x8xf32>
    %101 = arith.truncf %100 : vector<8x8xf32> to vector<8x8xbf16>
    %102 = vector.extract_strided_slice %8 {offsets = [0, 24], sizes = [8, 8], strides = [1, 1]} : vector<8x32xbf16> to vector<8x8xbf16>
    %cst_33 = arith.constant dense<0.000000e+00> : vector<8x8xf32>
    %103 = tpu.matmul %101, %102, %cst_33 {dimension_numbers = #tpu.dot_dimension_numbers<[1], [0], [0], [1], [0, 0, 1, 1], [], []>} : vector<8x8xbf16>, vector<8x8xbf16>, vector<8x8xf32> -> vector<8x8xf32>
    %104 = vector.extract_strided_slice %6 {offsets = [0, 24], sizes = [8, 8], strides = [1, 1]} : vector<8x32xf32> to vector<8x8xf32>
    %105 = arith.mulf %103, %104 : vector<8x8xf32>
    %106 = tpu.concatenate %39, %61, %83, %105 in 1 : vector<8x8xf32>, vector<8x8xf32>, vector<8x8xf32>, vector<8x8xf32> -> vector<8x32xf32>
    %107 = arith.truncf %106 : vector<8x32xf32> to vector<8x32xbf16>
    %c0_34 = arith.constant 0 : index
    %c0_35 = arith.constant 0 : index
    %c0_36 = arith.constant 0 : index
    %108 = vector.load %arg5[%c0_34, %c0_35, %c0_36] : memref<1x8x32xbf16, #tpu.memory_space<vmem>>, vector<1x8x32xbf16>
    %109 = vector.shape_cast %108 : vector<1x8x32xbf16> to vector<8x32xbf16>
    %110 = vector.shape_cast %107 : vector<8x32xbf16> to vector<1x8x32xbf16>
    tpu.vector_store %arg5[%c0_34, %c0_35, %c0_36], %110 {strides = array<i32>} : memref<1x8x32xbf16, #tpu.memory_space<vmem>>, vector<1x8x32xbf16>,
    return
  }
  func.func @transform_0(%arg0: i32) -> (i32, i32, i32) {
    %c0_i32 = arith.constant 0 : i32
    %c0_i32_0 = arith.constant 0 : i32
    %c0_i32_1 = arith.constant 0 : i32
    return %arg0, %c0_i32, %c0_i32_0 : i32, i32, i32
  }
  func.func @transform_1(%arg0: i32) -> (i32, i32, i32) {
    %c0_i32 = arith.constant 0 : i32
    %c0_i32_0 = arith.constant 0 : i32
    %c0_i32_1 = arith.constant 0 : i32
    return %arg0, %c0_i32, %c0_i32_0 : i32, i32, i32
  }
  func.func @transform_2(%arg0: i32) -> (i32, i32, i32) {
    %c0_i32 = arith.constant 0 : i32
    %c0_i32_0 = arith.constant 0 : i32
    %c0_i32_1 = arith.constant 0 : i32
    return %arg0, %c0_i32, %c0_i32_0 : i32, i32, i32
  }
  func.func @transform_3(%arg0: i32) -> (i32, i32, i32) {
    %c0_i32 = arith.constant 0 : i32
    %c0_i32_0 = arith.constant 0 : i32
    %c0_i32_1 = arith.constant 0 : i32
    return %arg0, %c0_i32, %c0_i32_0 : i32, i32, i32
  }
  func.func @transform_4(%arg0: i32) -> (i32, i32, i32) {
    %c0_i32 = arith.constant 0 : i32
    %c0_i32_0 = arith.constant 0 : i32
    %c0_i32_1 = arith.constant 0 : i32
    return %arg0, %c0_i32, %c0_i32_0 : i32, i32, i32
  }
}

module attributes {stable_mosaic.version = 11 : i64} {
  func.func @_linear_kernel(%arg0: i32, %arg1: i32, %arg2: i32, %arg3: memref<16x32xbf16, #tpu.memory_space<vmem>>, %arg4: memref<32x200xbf16, #tpu.memory_space<vmem>>, %arg5: memref<1x200xf32, #tpu.memory_space<vmem>>, %arg6: memref<16x200xf32, #tpu.memory_space<vmem>>, %arg7: memref<16x200xf32, #tpu.memory_space<vmem>>) attributes {dimension_semantics = [#tpu.dimension_semantics<parallel>, #tpu.dimension_semantics<parallel>, #tpu.dimension_semantics<arbitrary>], iteration_bounds = array<i64: 1, 1, 1>, scalar_prefetch = 0 : i64, scratch_operands = 1 : i64, tpu.core_type = #tpu.core_type<tc>, window_params = [{transform_indices = @transform_0, window_bounds = array<i64: 16, 32>}, {transform_indices = @transform_1, window_bounds = array<i64: 32, 200>}, {transform_indices = @transform_2, window_bounds = array<i64: 1, 200>}, {transform_indices = @transform_3, window_bounds = array<i64: 16, 200>}]} {
    %c0_i32 = arith.constant 0 : i32
    %0 = arith.cmpi eq, %arg2, %c0_i32 : i32
    %1 = arith.extui %0 : i1 to i32
    %c0_i32_0 = arith.constant 0 : i32
    %2 = arith.cmpi ne, %1, %c0_i32_0 : i32
    scf.if %2 {
      %cst_10 = arith.constant 0.000000e+00 : f32
      %12 = vector.broadcast %cst_10 : f32 to vector<16x200xf32>
      %c0_11 = arith.constant 0 : index
      %c0_12 = arith.constant 0 : index
      %13 = vector.load %arg7[%c0_11, %c0_12] : memref<16x200xf32, #tpu.memory_space<vmem>>, vector<16x200xf32>
      tpu.vector_store %arg7[%c0_11, %c0_12], %12 {strides = array<i32>} : memref<16x200xf32, #tpu.memory_space<vmem>>, vector<16x200xf32>,
    } else {
    }
    %c0 = arith.constant 0 : index
    %c0_1 = arith.constant 0 : index
    %3 = vector.load %arg7[%c0, %c0_1] : memref<16x200xf32, #tpu.memory_space<vmem>>, vector<16x200xf32>
    %c0_2 = arith.constant 0 : index
    %c0_3 = arith.constant 0 : index
    %4 = vector.load %arg3[%c0_2, %c0_3] : memref<16x32xbf16, #tpu.memory_space<vmem>>, vector<16x32xbf16>
    %c0_4 = arith.constant 0 : index
    %c0_5 = arith.constant 0 : index
    %5 = vector.load %arg4[%c0_4, %c0_5] : memref<32x200xbf16, #tpu.memory_space<vmem>>, vector<32x200xbf16>
    %cst = arith.constant dense<0.000000e+00> : vector<16x200xf32>
    %6 = tpu.matmul %4, %5, %cst {dimension_numbers = #tpu.dot_dimension_numbers<[1], [0], [0], [1], [0, 0, 1, 1], [], []>} : vector<16x32xbf16>, vector<32x200xbf16>, vector<16x200xf32> -> vector<16x200xf32>
    %7 = arith.addf %3, %6 : vector<16x200xf32>
    %c0_6 = arith.constant 0 : index
    %c0_7 = arith.constant 0 : index
    %8 = vector.load %arg7[%c0_6, %c0_7] : memref<16x200xf32, #tpu.memory_space<vmem>>, vector<16x200xf32>
    tpu.vector_store %arg7[%c0_6, %c0_7], %7 {strides = array<i32>} : memref<16x200xf32, #tpu.memory_space<vmem>>, vector<16x200xf32>,
    %c0_i32_8 = arith.constant 0 : i32
    %9 = arith.cmpi eq, %arg2, %c0_i32_8 : i32
    %10 = arith.extui %9 : i1 to i32
    %c0_i32_9 = arith.constant 0 : i32
    %11 = arith.cmpi ne, %10, %c0_i32_9 : i32
    scf.if %11 {
      %c0_10 = arith.constant 0 : index
      %c0_11 = arith.constant 0 : index
      %12 = vector.load %arg7[%c0_10, %c0_11] : memref<16x200xf32, #tpu.memory_space<vmem>>, vector<16x200xf32>
      %c0_12 = arith.constant 0 : index
      %c0_13 = arith.constant 0 : index
      %13 = vector.load %arg5[%c0_12, %c0_13] : memref<1x200xf32, #tpu.memory_space<vmem>>, vector<1x200xf32>
      %14 = vector.broadcast %13 : vector<1x200xf32> to vector<16x200xf32>
      %15 = arith.addf %12, %14 : vector<16x200xf32>
      %c0_14 = arith.constant 0 : index
      %c0_15 = arith.constant 0 : index
      %16 = vector.load %arg6[%c0_14, %c0_15] : memref<16x200xf32, #tpu.memory_space<vmem>>, vector<16x200xf32>
      tpu.vector_store %arg6[%c0_14, %c0_15], %15 {strides = array<i32>} : memref<16x200xf32, #tpu.memory_space<vmem>>, vector<16x200xf32>,
    } else {
    }
    return
  }
  func.func @transform_0(%arg0: i32, %arg1: i32, %arg2: i32) -> (i32, i32) {
    %c0_i32 = arith.constant 0 : i32
    return %arg0, %arg2 : i32, i32
  }
  func.func @transform_1(%arg0: i32, %arg1: i32, %arg2: i32) -> (i32, i32) {
    %c0_i32 = arith.constant 0 : i32
    return %arg2, %arg1 : i32, i32
  }
  func.func @transform_2(%arg0: i32, %arg1: i32, %arg2: i32) -> (i32, i32) {
    %c0_i32 = arith.constant 0 : i32
    %c0_i32_0 = arith.constant 0 : i32
    return %c0_i32, %arg1 : i32, i32
  }
  func.func @transform_3(%arg0: i32, %arg1: i32, %arg2: i32) -> (i32, i32) {
    %c0_i32 = arith.constant 0 : i32
    return %arg0, %arg1 : i32, i32
  }
}

</mosaic_0001>

<bundles_post_ra>
// kernel: transformer_forward.63
= control target key start
LH: loop header
LB: loop body
LE: loop exit
PB: predicated region body
PF: predicated region fallthrough
CT: control target
= control target key end

     0   :  { %vm27_vm0 = vcmask 261120   ;;  %vm81_vm1 = vcmask 257024   ;;  %s153_s0 = inlined_call_operand.vmem [shape: bf16[16,32], index: 0, kind: input, shape index: {}]   ;;  %s154_s1 = inlined_call_operand.vmem [shape: bf16[16,32], index: 1, kind: input, shape index: {}]   ;;  %s155_s2 = inlined_call_operand.vmem [shape: f32[1,32], index: 2, kind: input, shape index: {}]   ;;  %s156_s3 = inlined_call_operand.vmem [shape: f32[1,32], index: 3, kind: input, shape index: {}]   ;;  %s157_s4 = inlined_call_operand.vmem [shape: bf16[16,32], index: 4, kind: output, shape index: {}]  }
   0x1   :  { %v95_v0 = vld [vmem:[%s153_s0] sm:$0xff]  }
   0x2   :  { %v99_v1 = vld [vmem:[%s154_s1] sm:$0xff]   ;;  %v96_v2 = vunpack.c.l.bf16 %v95_v0  ;;  %v97_v4 = vunpack.c.h.bf16 %v95_v0 }
   0x3   :  { %v100_v3 = vunpack.c.l.bf16 %v99_v1  ;;  %v101_v5 = vunpack.c.h.bf16 %v99_v1  ;;  %v88_v27 = vld [vmem:[%s155_s2] ss:$0 sm:$0xff] }
   0x4   :  { %v89_v29 = vld [vmem:[%s156_s3] ss:$0 sm:$0xff] }
   0x5   :  { %v25_v6 = vadd.f32 %v100_v3, %v96_v2  ;;  %v26_v7 = vadd.f32 %v101_v5, %v97_v4 }
   0x7   :  { %v28_v8 = vsel %vm27_vm0, %v25_v6, 0.0  ;;  %v31_v9 = vsel %vm27_vm0, %v26_v7, 0.0 }
   0x8   :  { %29 = vadd.xlane.f32.xlu0 %v28_v8 }
   0xc   :  { %32 = vadd.xlane.f32.xlu0 %v31_v9 }
  0x95   :  { %v30_v10 = vpop.xlane.xlu0 %29 }
  0x96   :  { %v35_v11 = vmul.f32 0.03125, %v30_v10 }
  0x98   :  { %v37_v12 = vsub.f32 %v25_v6, %v35_v11 }
  0x99   :  { %v33_v13 = vpop.xlane.xlu0 %32 }
  0x9a   :  { %v36_v14 = vmul.f32 0.03125, %v33_v13  ;;  %v39_v15 = vmul.f32 %v37_v12, %v37_v12 }
  0x9c   :  { %v38_v16 = vsub.f32 %v26_v7, %v36_v14  ;;  %v41_v17 = vsel %vm27_vm0, %v39_v15, 0.0 }
  0x9d   :  { %42 = vadd.xlane.f32.xlu1 %v41_v17 }
  0x9e   :  { %v40_v18 = vmul.f32 %v38_v16, %v38_v16 }
  0xa0   :  { %v44_v19 = vsel %vm27_vm0, %v40_v18, 0.0 }
  0xa1   :  { %45 = vadd.xlane.f32.xlu1 %v44_v19 }
 0x12a   :  { %v43_v20 = vpop.xlane.xlu1 %42 }
 0x12b   :  { %v47_v21 = vmul.f32 0.03125, %v43_v20 }
 0x12d   :  { %v49_v22 = vadd.f32 1e-05, %v47_v21 }
 0x12e   :  { %v46_v23 = vpop.xlane.xlu1 %45 }
 0x12f   :  { %102 = vrsqrt.f32 %v49_v22  ;;  %v48_v24 = vmul.f32 0.03125, %v46_v23 }
 0x131   :  { %v50_v25 = vadd.f32 1e-05, %v48_v24 }
 0x133   :  { %104 = vrsqrt.f32 %v50_v25 }
 0x139   :  { %v103_v26 = vpop.eup %102 }
 0x13a   :  { %v53_v28 = vmul.f32 %v103_v26, %v37_v12 }
 0x13c   :  { %v62_v30 = vmul.f32 %v88_v27, %v53_v28 }
 0x13d   :  { %v105_v31 = vpop.eup %104 }
 0x13e   :  { %v71_v32 = vadd.f32 %v89_v29, %v62_v30  ;;  %v54_v33 = vmul.f32 %v105_v31, %v38_v16 }
 0x140   :  { %v92_v34 = vpack.c.bf16 %v71_v32, %v71_v32  ;;  %v63_v35 = vmul.f32 %v88_v27, %v54_v33 }
 0x142   :  { %82 = vst.msk [vmem:[%s157_s4] sm:$0xf] %vm81_vm1, %v92_v34  ;;  %v72_v36 = vadd.f32 %v89_v29, %v63_v35 }
 0x144   :  { %v93_v37 = vpack.c.bf16 %v72_v36, %v72_v36 }
 0x146   :  { %83 = vst.msk [vmem:[%s157_s4 + $0x4] sm:$0xf] %vm81_vm1, %v93_v37 }

// kernel: transformer_forward.62
= control target key start
LH: loop header
LB: loop body
LE: loop exit
PB: predicated region body
PF: predicated region fallthrough
CT: control target
= control target key end

     0   :  { %vm19_vm0 = vcmask 261120   ;;  %v150_v0 = vmov 0.0   ;;  %vm151_vm1 = vmmov 0   ;;  %vm118_vm2 = vcmask 257024   ;;  %s195_s1 = inlined_call_operand.vmem [shape: bf16[32,32], index: 1, kind: input, shape index: {}]   ;;  %s196_s0 = inlined_call_operand.vmem [shape: bf16[16,32], index: 0, kind: input, shape index: {}]   ;;  %s197_s2 = inlined_call_operand.vmem [shape: f32[1,32], index: 2, kind: input, shape index: {}]   ;;  %s198_s3 = inlined_call_operand.vmem [shape: bf16[16,32], index: 3, kind: output, shape index: {}]  }
   0x1   :  { %137 = vmatprep.subr.bf16.mxu0 %v150_v0  ;;  %v147_v1 = vld [vmem:[%s195_s1] sm:$0xff]   ;;  %141 = vmatprep.mubr.msk.bf16.mxu0 %vm151_vm1, %v150_v0  ;;  %20 = vst.msk [vmem:[#allocation2] sm:$0xff] %vm19_vm0, %v150_v0  ;;  %21 = vst.msk [vmem:[#allocation2 + $0x8] sm:$0xff] %vm19_vm0, %v150_v0  ;;  %v148_v2 = vld [vmem:[%s195_s1 + $0x8] sm:$0xff]  }
   0x2   :  { %138 = vmatpush3.bf16.msra.mxu0 %v147_v1  ;;  %v149_v3 = vld [vmem:[%s196_s0] sm:$0xff]  }
   0x3   :  { %139 = vmatprep.subr.bf16.mxu0 %v150_v0  ;;  %v129_v12 = vld [vmem:[%s197_s2] ss:$0 sm:$0xff] }
   0x6   :  { %140 = vmatpush3.bf16.msra.mxu0 %v148_v2 }
   0x8   :  { %v22_v4 = vld [vmem:[#allocation2] sm:$0xff]  ;;  %v23_v6 = vld [vmem:[#allocation2 + $0x8] sm:$0xff] }
   0x9   :  { %142 = vmatmul.mubr.msk.bf16.vlgmr.msra.gmra.mrb[0].mxu0 %vm19_vm0, %v149_v3 }
  0xdc   :  { %v85_v5 = vpop.f32.mrb[0].mxu0 }
  0xdd   :  { %v92_v7 = vadd.f32 %v85_v5, %v22_v4  ;;  %v143_v8 = vpop.f32.mrb[1].mxu0 }
  0xde   :  { %v88_v9 = vpop.f32.mrb[2].mxu0 }
  0xdf   :  { %94 = vst.msk [vmem:[#allocation2] sm:$0xff] %vm19_vm0, %v92_v7  ;;  %v93_v10 = vadd.f32 %v88_v9, %v23_v6  ;;  %v144_v11 = vpop.f32.mrb[3].mxu0 }
  0xe1   :  { %95 = vst.msk [vmem:[#allocation2 + $0x8] sm:$0xff] %vm19_vm0, %v93_v10 }
  0xe6   :  { %v99_v13 = vld [vmem:[#allocation2] sm:$0xff] }
  0xe7   :  { %v108_v14 = vadd.f32 %v129_v12, %v99_v13 }
  0xe8   :  { %v100_v15 = vld [vmem:[#allocation2 + $0x8] sm:$0xff] }
  0xe9   :  { %v132_v16 = vpack.c.bf16 %v108_v14, %v108_v14  ;;  %v109_v17 = vadd.f32 %v129_v12, %v100_v15 }
  0xeb   :  { %119 = vst.msk [vmem:[%s198_s3] sm:$0xf] %vm118_vm2, %v132_v16  ;;  %v133_v18 = vpack.c.bf16 %v109_v17, %v109_v17 }
  0xed   :  { %120 = vst.msk [vmem:[%s198_s3 + $0x4] sm:$0xf] %vm118_vm2, %v133_v18 }

// kernel: transformer_forward.59
= control target key start
LH: loop header
LB: loop body
LE: loop exit
PB: predicated region body
PF: predicated region fallthrough
CT: control target
= control target key end

     0   :  { %vm19_vm0 = vcmask 523264   ;;  %v151_v0 = vmov 0.0   ;;  %vm152_vm1 = vmmov 0   ;;  %vm47_vm2 = vcmask 261120   ;;  %s195_s1 = inlined_call_operand.vmem [shape: bf16[32,64], index: 1, kind: input, shape index: {}]   ;;  %s196_s0 = inlined_call_operand.vmem [shape: bf16[16,32], index: 0, kind: input, shape index: {}]   ;;  %s197_s2 = inlined_call_operand.vmem [shape: f32[1,64], index: 2, kind: input, shape index: {}]   ;;  %s198_s3 = inlined_call_operand.vmem [shape: bf16[16,64], index: 3, kind: output, shape index: {}]  }
   0x1   :  { %138 = vmatprep.subr.bf16.mxu0 %v151_v0  ;;  %v148_v1 = vld [vmem:[%s195_s1] sm:$0xff]   ;;  %142 = vmatprep.mubr.msk.bf16.mxu0 %vm152_vm1, %v151_v0  ;;  %20 = vst.msk [vmem:[#allocation2] sm:$0xff] %vm19_vm0, %v151_v0  ;;  %21 = vst.msk [vmem:[#allocation2 + $0x8] sm:$0xff] %vm19_vm0, %v151_v0  ;;  %v149_v2 = vld [vmem:[%s195_s1 + $0x8] sm:$0xff]   ;;  %vm119_vm3 = vcmask 519168  }
   0x2   :  { %139 = vmatpush3.bf16.msra.mxu0 %v148_v1  ;;  %v150_v3 = vld [vmem:[%s196_s0] sm:$0xff]  }
   0x3   :  { %140 = vmatprep.subr.bf16.mxu0 %v151_v0  ;;  %v130_v12 = vld [vmem:[%s197_s2] ss:$0 sm:$0xff] }
   0x6   :  { %141 = vmatpush3.bf16.msra.mxu0 %v149_v2 }
   0x8   :  { %v22_v4 = vld [vmem:[#allocation2] sm:$0xff]  ;;  %v23_v6 = vld [vmem:[#allocation2 + $0x8] sm:$0xff] }
   0x9   :  { %143 = vmatmul.mubr.msk.bf16.vlgmr.msra.gmra.mrb[0].mxu0 %vm47_vm2, %v150_v3 }
  0xdc   :  { %v85_v5 = vpop.f32.mrb[0].mxu0 }
  0xdd   :  { %v92_v7 = vadd.f32 %v85_v5, %v22_v4  ;;  %v144_v8 = vpop.f32.mrb[1].mxu0 }
  0xde   :  { %v88_v9 = vpop.f32.mrb[2].mxu0 }
  0xdf   :  { %95 = vst.msk [vmem:[#allocation2] sm:$0xff] %vm19_vm0, %v92_v7  ;;  %v93_v10 = vadd.f32 %v88_v9, %v23_v6  ;;  %v145_v11 = vpop.f32.mrb[3].mxu0 }
  0xe1   :  { %96 = vst.msk [vmem:[#allocation2 + $0x8] sm:$0xff] %vm19_vm0, %v93_v10 }
  0xe6   :  { %v100_v13 = vld [vmem:[#allocation2] sm:$0xff] }
  0xe7   :  { %v109_v14 = vadd.f32 %v130_v12, %v100_v13 }
  0xe8   :  { %v101_v15 = vld [vmem:[#allocation2 + $0x8] sm:$0xff] }
  0xe9   :  { %v133_v16 = vpack.c.bf16 %v109_v14, %v109_v14  ;;  %v110_v17 = vadd.f32 %v130_v12, %v101_v15 }
  0xeb   :  { %120 = vst.msk [vmem:[%s198_s3] sm:$0xf] %vm119_vm3, %v133_v16  ;;  %v134_v18 = vpack.c.bf16 %v110_v17, %v110_v17 }
  0xed   :  { %121 = vst.msk [vmem:[%s198_s3 + $0x4] sm:$0xf] %vm119_vm3, %v134_v18 }

// kernel: transformer_forward.61
= control target key start
LH: loop header
LB: loop body
LE: loop exit
PB: predicated region body
PF: predicated region fallthrough
CT: control target
= control target key end

     0   :  { %s1009_s15 = smov 0   ;;  %s1123_s0 = inlined_call_operand.vmem [shape: bf16[2,8,64], index: 0, kind: input, shape index: {}]   ;;  %s1124_s1 = inlined_call_operand.vmem [shape: bf16[2,8,64], index: 1, kind: input, shape index: {}]   ;;  %s1125_s2 = inlined_call_operand.vmem [shape: s32[2,8,1], index: 2, kind: input, shape index: {}]   ;;  %s1126_s3 = inlined_call_operand.vmem [shape: s32[2,1,8], index: 3, kind: input, shape index: {}]   ;;  %s1127_s4 = inlined_call_operand.vmem [shape: bf16[2,8,32], index: 4, kind: output, shape index: {}]  }
   0x1 LB: > { %s837_s16 = sadd.s32 4294967295, %s969_s15   ;;  %p841_p0 = scmp.ge.s32.totalorder %s969_s15, 1  ;;  %s969_s15 = sphi %s1009_s15, %s14_s15  }
   0x2   : > { %p187_p1 = scmp.lt.s32.totalorder %s969_s15, 3 }
   0x4   : > { %p188_p2 = pnand %p841_p0, %p187_p1 }
   0x5   : > { %p222_p3 = scmp.lt.s32.totalorder (!%p188_p2), %s837_s16, 1  ;;  %v971_v0 = vmov (!%p188_p2), 0.0   ;;  %vm972_vm0 = vmmov (!%p188_p2), 0   ;;  %v973_v1 = vmov (!%p188_p2), 0   ;;  %vm262_vm1 = vcmask (!%p188_p2), 64512   ;;  %s974_s28 = smov (!%p188_p2), 96  }
   0x6   : > { %191 = sbr.rel (%p188_p2) target bundleno = 1489 (0x5d1), region = 36  ;;  %875 = vmatprep.subr.bf16.mxu0 (!%p188_p2), %v971_v0  ;;  %877 = vmatprep.mubr.msk.bf16.mxu0 (!%p188_p2), %vm972_vm0, %v971_v0  ;;  %s975_s29 = smov (!%p188_p2), 120   ;;  %v256_v7 = vlaneseq (!%p188_p2)  ;;  %vm331_vm5 = vcmask (!%p188_p2), 1043456   ;;  %vm744_vm6 = vcmask (!%p188_p2), 130048   ;;  %vm746_vm7 = vcmask (!%p188_p2), 195584  }
   0x7   : > { %944 = vset.pattern.permute.xlu0 (!%p188_p2), %v973_v1  ;;  %881 = vmatprep.subr.bf16.mxu1 (!%p188_p2), %v971_v0  ;;  %s976_s7 = smov (!%p188_p2), 104   ;;  %s977_s8 = smov (!%p188_p2), 112   ;;  %vm749_vm8 = vcmask (!%p188_p2), 257024  }
   0x8   : > { %883 = vmatprep.mubr.msk.bf16.mxu1 (!%p188_p2), %vm972_vm0, %v971_v0  ;;  %v257_v10 = vshrl.u32 (!%p188_p2), %v256_v7, 7  ;;  %v259_v11 = vand.u32 (!%p188_p2), 127, %v256_v7  ;;  %s978_s9 = smov (!%p188_p2), 88   ;;  %s979_s10 = smov (!%p188_p2), 80  }
   0x9   : > { %s980_s11 = smov (!%p188_p2), 72   ;;  %s981_s12 = smov (!%p188_p2), 8  }
   0xa   : > { %vm260_vm2 = vcmp.le.s32.totalorder (!%p188_p2), %v259_v11, %v257_v10  ;;  %s982_s13 = smov (!%p188_p2), 16   ;;  %s983_s14 = smov (!%p188_p2), 24  }
   0xd   : > { %s1131_s16 = smov (!%p222_p3, %s837_s16), 1 }
   0xe   : > { %s1023_s17 = sshll.u32 %s1131_s16, 2  ;;  %s844_s18 = sshll.u32 %s1131_s16, 3 }
   0xf   : > { %s229_s21 = scalar_lea.vmem %s1124_s1, %s1023_s17  ;;  %s233_s24 = scalar_lea.vmem %s1125_s2, %s844_s18 }
  0x10   : > { %v243_v2 = vld [vmem:[%s229_s21] sm:$0xf]  ;;  %s225_s27 = scalar_lea.vmem %s1123_s0, %s1023_s17  ;;  %s236_s6 = scalar_lea.vmem %s1126_s3, %s1131_s16 }
  0x11   : > { %v267_v3 = vsel %vm262_vm1, %v243_v2, 0  ;;  %v245_v4 = vld [vmem:[%s233_s24] sm:$0xff]  ;;  %v1044_v6 = vcombine.low %v243_v2, %v243_v2  ;;  %s240_s19 = scalar_lea.vmem %s1127_s4, %s1023_s17 }
  0x12   : > { %876 = vmatpush3.bf16.xpose.msra.mxu0 %v267_v3  ;;  %248 = vperm.xlu0 %944, %v245_v4   ;;  %v1038_v5 = vld [vmem:[%s225_s27] sm:$0xf] }
  0x13   : > { %893 = vmatprep.subr.bf16.mxu0 %v971_v0  ;;  %326 = vrot.lane.b32.xlu1 %v1044_v6, %s974_s28  ;;  %v846_v8 = vld [vmem:[%s236_s6] ss:$0 sm:$0xff]  ;;  %v850_v28 = vcombine.low %v1038_v5, %v1038_v5 }
  0x17   : > { %385 = vrot.lane.b32.xlu1 %v1044_v6, %s975_s29 }
  0x19   : > { %878 = vmatmul.mubr.msk.bf16.vlgmr.msra.gmra.mrb[0].mxu0 %vm262_vm1, %v1038_v5 }
  0x1a   : > { %895 = vmatprep.mubr.msk.bf16.mxu0 %vm972_vm0, %v971_v0 }
  0x85   : > { %v327_v21 = vpop.permute.xlu1 %326 }
  0x86   : > { %v333_v22 = vsel %vm331_vm5, %v327_v21, 0 }
  0x87   : > { %882 = vmatpush3.bf16.msra.mxu1 %v333_v22 }
  0x88   : > { %887 = vmatprep.subr.bf16.mxu1 %v971_v0 }
  0x89   : > { %v386_v29 = vpop.permute.xlu1 %385 }
  0x8a   : > { %v391_v35 = vsel %vm262_vm1, %v386_v29, 0 }
  0x91   : > { %v249_v9 = vpop.permute.xlu0 %248 }
  0x92   : > { %v254_v12 = vmul.u32 %v846_v8, %v249_v9 }
  0x94   : > { %vm255_vm3 = vcmp.gt.s32.totalorder %v254_v12, 0 }
  0x95   : > { %vm1053_vm4 = vmand %vm255_vm3, %vm260_vm2 }
  0xec   : > { %v303_v14 = vpop.f32.mrb[0].mxu0 }
  0xed   : > { %v309_v15 = vmul.f32 0.0625, %v303_v14  ;;  %v879_v16 = vpop.f32.mrb[1].mxu0 }
  0xee   : > { %v306_v17 = vpop.f32.mrb[2].mxu0 }
  0xef   : > { %v880_v18 = vpop.f32.mrb[3].mxu0  ;;  %v310_v19 = vsel %vm1053_vm4, %v309_v15, -1e+20 }
  0xf0   : > { %v311_v20 = vsel %vm262_vm1, %v310_v19, -inf }
  0xf1   : > { %312 = vmax.xlane.f32.xlu0 %v311_v20 }
 0x107   : > { %617 = vrot.lane.b32.xlu0 %v1044_v6, %s976_s7 }
 0x17e   : > { %v313_v23 = vpop.xlane.xlu0 %312 }
 0x17f   : > { %v314_v24 = vsub.f32 %v310_v19, %v313_v23  ;;  %v244_v19 = vunpack.c.l.bf16 %v1038_v5 }
 0x181   : > { %v315_v25 = vmul.f32 1.442695, %v314_v24 }
 0x182   : > { %v618_v38 = vpop.permute.xlu0 %617 }
 0x183   : > { %947 = vpow2.f32 %v315_v25  ;;  %v623_v40 = vsel %vm262_vm1, %v618_v38, 0 }
 0x18d   : > { %v948_v26 = vpop.eup %947 }
 0x18e   : > { %v317_v27 = vsel %vm262_vm1, %v948_v26, 0.0 }
 0x18f   : > { %318 = vadd.xlane.f32.xlu1 %v317_v27 }
 0x1a0   : > { %383 = vrot.lane.b32.xlu1 %v850_v28, %s975_s29 }
 0x1a4   : > { %501 = vrot.lane.b32.xlu1 %v1044_v6, %s977_s8 }
 0x1a8   : > { %499 = vrot.lane.b32.xlu1 %v850_v28, %s977_s8 }
 0x1ac   : > { %615 = vrot.lane.b32.xlu1 %v850_v28, %s976_s7 }
 0x21c   : > { %v319_v30 = vpop.xlane.xlu1 %318 }
 0x21d   : > { %949 = vrcp.f32 %v319_v30 }
 0x220   : > { %v384_v33 = vpop.permute.xlu1 %383 }
 0x224   : > { %v502_v36 = vpop.permute.xlu1 %501 }
 0x225   : > { %v507_v37 = vsel %vm262_vm1, %v502_v36, 0 }
 0x227   : > { %v950_v31 = vpop.eup %949 }
 0x228   : > { %v321_v32 = vmul.f32 %v950_v31, %v948_v26  ;;  %v500_v39 = vpop.permute.xlu1 %499 }
 0x22a   : > { %v322_v34 = vpack.c.bf16 %v321_v32, %v321_v32 }
 0x22c   : > { %884 = vmatmul.mubr.msk.bf16.vlgmr.msra.gmra.mrb[0].mxu1 %vm262_vm1, %v322_v34  ;;  %v616_v41 = vpop.permute.xlu1 %615 }
 0x22d   : > { %888 = vmatpush3.bf16.xpose.msra.mxu1 %v391_v35  ;;  %889 = vmatprep.mubr.msk.bf16.mxu1 %vm972_vm0, %v971_v0 }
 0x22e   : > { %899 = vmatprep.subr.bf16.mxu1 %v971_v0 }
 0x234   : > { %890 = vmatmul.mubr.msk.bf16.vlgmr.msra.gmra.mrb[4].mxu1 %vm262_vm1, %v384_v33 }
 0x235   : > { %900 = vmatpush3.bf16.xpose.msra.mxu1 %v507_v37  ;;  %901 = vmatprep.mubr.msk.bf16.mxu1 %vm972_vm0, %v971_v0 }
 0x236   : > { %911 = vmatprep.subr.bf16.mxu1 %v971_v0 }
 0x23c   : > { %902 = vmatmul.mubr.msk.bf16.vlgmr.msra.gmra.mrb[8].mxu1 %vm262_vm1, %v500_v39 }
 0x23d   : > { %912 = vmatpush3.bf16.xpose.msra.mxu1 %v623_v40  ;;  %913 = vmatprep.mubr.msk.bf16.mxu1 %vm972_vm0, %v971_v0 }
 0x244   : > { %914 = vmatmul.mubr.msk.bf16.vlgmr.msra.gmra.mrb[12].mxu1 %vm262_vm1, %v616_v41 }
 0x2ff   : > { %v1083_v42 = vpop.f32.mrb[0].mxu1 }
 0x300   : > { %v885_v43 = vpop.f32.mrb[1].mxu1 }
 0x301   : > { %v372_v44 = vpop.f32.mrb[2].mxu1 }
 0x302   : > { %v886_v45 = vpop.f32.mrb[3].mxu1 }
 0x307   : > { %v427_v46 = vpop.f32.mrb[4].mxu1 }
 0x308   : > { %v433_v47 = vmul.f32 0.0625, %v427_v46  ;;  %v891_v48 = vpop.f32.mrb[5].mxu1 }
 0x309   : > { %v430_v49 = vpop.f32.mrb[6].mxu1 }
 0x30a   : > { %v892_v50 = vpop.f32.mrb[7].mxu1  ;;  %v434_v51 = vsel %vm1053_vm4, %v433_v47, -1e+20 }
 0x30b   : > { %v435_v52 = vsel %vm262_vm1, %v434_v51, -inf }
 0x30c   : > { %436 = vmax.xlane.f32.xlu1 %v435_v52 }
 0x30f   : > { %v543_v53 = vpop.f32.mrb[8].mxu1 }
 0x310   : > { %v549_v54 = vmul.f32 0.0625, %v543_v53  ;;  %v903_v55 = vpop.f32.mrb[9].mxu1 }
 0x311   : > { %v546_v56 = vpop.f32.mrb[10].mxu1 }
 0x312   : > { %v550_v57 = vsel %vm1053_vm4, %v549_v54, -1e+20  ;;  %v904_v58 = vpop.f32.mrb[11].mxu1 }
 0x313   : > { %v551_v59 = vsel %vm262_vm1, %v550_v57, -inf }
 0x314   : > { %552 = vmax.xlane.f32.xlu0 %v551_v59 }
 0x317   : > { %v659_v60 = vpop.f32.mrb[12].mxu1 }
 0x318   : > { %v665_v61 = vmul.f32 0.0625, %v659_v60  ;;  %v915_v62 = vpop.f32.mrb[13].mxu1 }
 0x319   : > { %v662_v63 = vpop.f32.mrb[14].mxu1 }
 0x31a   : > { %v666_v1 = vsel %vm1053_vm4, %v665_v61, -1e+20  ;;  %v916_v2 = vpop.f32.mrb[15].mxu1 }
 0x31b   : > { %v667_v3 = vsel %vm262_vm1, %v666_v1, -inf }
 0x31c   : > { %668 = vmax.xlane.f32.xlu1 %v667_v3 }
 0x399   : > { %v437_v4 = vpop.xlane.xlu1 %436 }
 0x39a   : > { %v438_v7 = vsub.f32 %v434_v51, %v437_v4 }
 0x39c   : > { %v439_v8 = vmul.f32 1.442695, %v438_v7 }
 0x39e   : > { %951 = vpow2.f32 %v439_v8 }
 0x3a1   : > { %v553_v16 = vpop.xlane.xlu0 %552 }
 0x3a2   : > { %v554_v17 = vsub.f32 %v550_v57, %v553_v16 }
 0x3a4   : > { %v555_v18 = vmul.f32 1.442695, %v554_v17 }
 0x3a8   : > { %v952_v9 = vpop.eup %951 }
 0x3a9   : > { %v669_v10 = vpop.xlane.xlu1 %668  ;;  %v441_v11 = vsel %vm262_vm1, %v952_v9, 0.0 }
 0x3aa   : > { %v670_v12 = vsub.f32 %v666_v1, %v669_v10  ;;  %442 = vadd.xlane.f32.xlu1 %v441_v11 }
 0x3ac   : > { %v671_v14 = vmul.f32 1.442695, %v670_v12 }
 0x3ae   : > { %953 = vpow2.f32 %v671_v14 }
 0x3af   : > { %955 = vpow2.f32 %v555_v18 }
 0x3b8   : > { %v954_v15 = vpop.eup %953 }
 0x3b9   : > { %v673_v13 = vsel %vm262_vm1, %v954_v15, 0.0  ;;  %v956_v20 = vpop.eup %955 }
 0x3ba   : > { %674 = vadd.xlane.f32.xlu0 %v673_v13  ;;  %v557_v21 = vsel %vm262_vm1, %v956_v20, 0.0 }
 0x3bb   : > { %447 = vrot.lane.b32.xlu1 %v1044_v6, %s978_s9 }
 0x3d0   : > { %563 = vrot.lane.b32.xlu0 %v1044_v6, %s979_s10 }
 0x3d4   : > { %611 = vrot.lane.b32.xlu0 %v244_v19, %s979_s10 }
 0x3d8   : > { %376 = vrot.lane.b32.xlu0 %v244_v19, %s974_s28 }
 0x3df   : > { %558 = vadd.xlane.f32.xlu1 %v557_v21 }
 0x3f0   : > { %679 = vrot.lane.b32.xlu1 %v1044_v6, %s980_s11 }
 0x3f4   : > { %495 = vrot.lane.b32.xlu1 %v244_v19, %s978_s9 }
 0x3f8   : > { %727 = vrot.lane.b32.xlu1 %v244_v19, %s980_s11 }
 0x437   : > { %v443_v22 = vpop.xlane.xlu1 %442 }
 0x438   : > { %957 = vrcp.f32 %v443_v22 }
 0x43b   : > { %v448_v23 = vpop.permute.xlu1 %447 }
 0x43c   : > { %v453_v5 = vsel %vm331_vm5, %v448_v23, 0 }
 0x43d   : > { %894 = vmatpush3.bf16.msra.mxu0 %v453_v5 }
 0x43e   : > { %905 = vmatprep.subr.bf16.mxu0 %v971_v0 }
 0x442   : > { %v958_v24 = vpop.eup %957 }
 0x443   : > { %v445_v25 = vmul.f32 %v958_v24, %v952_v9 }
 0x445   : > { %v446_v26 = vpack.c.bf16 %v445_v25, %v445_v25 }
 0x447   : > { %896 = vmatmul.mubr.msk.bf16.vlgmr.msra.gmra.mrb[4].mxu0 %vm262_vm1, %v446_v26  ;;  %v675_v27 = vpop.xlane.xlu0 %674 }
 0x448   : > { %907 = vmatprep.mubr.msk.bf16.mxu0 %vm972_vm0, %v971_v0 }
 0x44b   : > { %v564_v6 = vpop.permute.xlu0 %563 }
 0x44c   : > { %v569_v28 = vsel %vm331_vm5, %v564_v6, 0 }
 0x44d   : > { %906 = vmatpush3.bf16.msra.mxu0 %v569_v28 }
 0x44e   : > { %917 = vmatprep.subr.bf16.mxu0 %v971_v0 }
 0x44f   : > { %v612_v45 = vpop.permute.xlu0 %611 }
 0x453   : > { %v377_v56 = vpop.permute.xlu0 %376 }
 0x454   : > { %v379_v58 = vmul.f32 %v377_v56, %v1083_v42 }
 0x46c   : > { %v559_v29 = vpop.xlane.xlu1 %558 }
 0x46d   : > { %959 = vrcp.f32 %v559_v29 }
 0x46e   : > { %961 = vrcp.f32 %v675_v27 }
 0x470   : > { %v680_v31 = vpop.permute.xlu1 %679 }
 0x471   : > { %v685_v33 = vsel %vm331_vm5, %v680_v31, 0 }
 0x474   : > { %v496_v38 = vpop.permute.xlu1 %495 }
 0x477   : > { %v960_v30 = vpop.eup %959 }
 0x478   : > { %v561_v32 = vmul.f32 %v960_v30, %v956_v20  ;;  %v962_v35 = vpop.eup %961 }
 0x479   : > { %v677_v36 = vmul.f32 %v962_v35, %v954_v15 }
 0x47a   : > { %v562_v34 = vpack.c.bf16 %v561_v32, %v561_v32 }
 0x47b   : > { %v678_v37 = vpack.c.bf16 %v677_v36, %v677_v36 }
 0x47c   : > { %908 = vmatmul.mubr.msk.bf16.vlgmr.msra.gmra.mrb[8].mxu0 %vm262_vm1, %v562_v34 }
 0x47d   : > { %918 = vmatpush3.bf16.msra.mxu0 %v685_v33  ;;  %919 = vmatprep.mubr.msk.bf16.mxu0 %vm972_vm0, %v971_v0  ;;  %v728_v0 = vpop.permute.xlu1 %727 }
 0x484   : > { %920 = vmatmul.mubr.msk.bf16.vlgmr.msra.gmra.mrb[12].mxu0 %vm262_vm1, %v678_v37 }
 0x51a   : > { %v489_v39 = vpop.f32.mrb[4].mxu0 }
 0x51b   : > { %v498_v40 = vmul.f32 %v496_v38, %v489_v39  ;;  %v897_v41 = vpop.f32.mrb[5].mxu0 }
 0x51c   : > { %v492_v43 = vpop.f32.mrb[6].mxu0 }
 0x51d   : > { %v898_v44 = vpop.f32.mrb[7].mxu0  ;;  %732 = vrot.lane.b32.xlu1 %v498_v40, %s981_s12 }
 0x54f   : > { %v605_v46 = vpop.f32.mrb[8].mxu0 }
 0x550   : > { %v614_v47 = vmul.f32 %v612_v45, %v605_v46  ;;  %v909_v48 = vpop.f32.mrb[9].mxu0 }
 0x551   : > { %v608_v49 = vpop.f32.mrb[10].mxu0 }
 0x552   : > { %v910_v50 = vpop.f32.mrb[11].mxu0  ;;  %736 = vrot.lane.b32.xlu0 %v614_v47, %s982_s13 }
 0x557   : > { %v721_v51 = vpop.f32.mrb[12].mxu0 }
 0x558   : > { %v730_v52 = vmul.f32 %v728_v0, %v721_v51  ;;  %v921_v53 = vpop.f32.mrb[13].mxu0 }
 0x559   : > { %v724_v54 = vpop.f32.mrb[14].mxu0 }
 0x55a   : > { %v922_v55 = vpop.f32.mrb[15].mxu0  ;;  %740 = vrot.lane.b32.xlu1 %v730_v52, %s983_s14 }
 0x58f   : > { %v733_v57 = vpop.permute.xlu1 %732 }
 0x590   : > { %v743_v60 = vsel %vm262_vm1, %v379_v58, %v733_v57 }
 0x5c4   : > { %v737_v59 = vpop.permute.xlu0 %736 }
 0x5c5   : > { %v745_v61 = vsel %vm744_vm6, %v743_v60, %v737_v59 }
 0x5cc   : > { %v741_v62 = vpop.permute.xlu1 %740 }
 0x5cd   : > { %v747_v63 = vsel %vm746_vm7, %v745_v61, %v741_v62 }
 0x5ce   : > { %v748_v1 = vpack.c.bf16 %v747_v63, %v747_v63 }
 0x5d0   : > { %750 = vst.msk [vmem:[%s240_s19] sm:$0xf] %vm749_vm8, %v748_v1 }
 0x5d1 PF: > { %s14_s15 = sadd.s32 1, %s969_s15  }
 0x5d2   : > { %p11_p4 = scmp.ge.s32.totalorder %s14_s15, 4  }
 0x5d4   :  { %13 = sbr.rel (!%p11_p4) target bundleno = 1 (0x1), region = 75 }

// kernel: transformer_forward.48
= control target key start
LH: loop header
LB: loop body
LE: loop exit
PB: predicated region body
PF: predicated region fallthrough
CT: control target
= control target key end

     0   :  { %v155_v0 = vmov 0.0   ;;  %vm156_vm0 = vmmov 0   ;;  %vm46_vm1 = vcmask 261120   ;;  %s192_s1 = inlined_call_operand.vmem [shape: bf16[32,128], index: 1, kind: input, shape index: {}]   ;;  %s193_s0 = inlined_call_operand.vmem [shape: bf16[16,32], index: 0, kind: input, shape index: {}]   ;;  %s194_s2 = inlined_call_operand.vmem [shape: f32[1,128], index: 2, kind: input, shape index: {}]   ;;  %s195_s3 = inlined_call_operand.vmem [shape: bf16[16,128], index: 3, kind: output, shape index: {}]  }
   0x1   :  { %142 = vmatprep.subr.bf16.mxu0 %v155_v0  ;;  %v152_v1 = vld [vmem:[%s192_s1] sm:$0xff]   ;;  %146 = vmatprep.mubr.msk.bf16.mxu0 %vm156_vm0, %v155_v0  ;;  %v153_v2 = vld [vmem:[%s192_s1 + $0x8] sm:$0xff]  }
   0x2   :  { %143 = vmatpush3.bf16.msra.mxu0 %v152_v1  ;;  %v154_v3 = vld [vmem:[%s193_s0] sm:$0xff]  }
   0x3   :  { %144 = vmatprep.subr.bf16.mxu0 %v155_v0  ;;  %v129_v4 = vld [vmem:[%s194_s2] ss:$0 sm:$0xff] }
   0x6   :  { %145 = vmatpush3.bf16.msra.mxu0 %v153_v2 }
   0x9   :  { %147 = vmatmul.mubr.msk.bf16.vlgmr.msra.gmra.mrb[0].mxu0 %vm46_vm1, %v154_v3 }
  0xdc   :  { %v84_v5 = vpop.f32.mrb[0].mxu0 }
  0xdd   :  { %v107_v6 = vadd.f32 %v129_v4, %v84_v5  ;;  %v148_v7 = vpop.f32.mrb[1].mxu0 }
  0xde   :  { %v87_v8 = vpop.f32.mrb[2].mxu0 }
  0xdf   :  { %v108_v9 = vadd.f32 %v129_v4, %v87_v8  ;;  %v149_v10 = vpop.f32.mrb[3].mxu0  ;;  %v109_v11 = vmax.f32 %v107_v6, 0.0 }
  0xe1   :  { %v110_v12 = vmax.f32 %v108_v9, 0.0 }
  0xe3   :  { %v137_v13 = vpack.c.bf16 %v110_v12, %v109_v11 }
  0xe5   :  { %138 = vst [vmem:[%s195_s3] sm:$0xff] %v137_v13  }

// kernel: transformer_forward.49
= control target key start
LH: loop header
LB: loop body
LE: loop exit
PB: predicated region body
PF: predicated region fallthrough
CT: control target
= control target key end

     0   :  { %vm19_vm0 = vcmask 261120   ;;  %v225_v0 = vmov 0.0   ;;  %vm226_vm1 = vmmov 0   ;;  %vm164_vm2 = vcmask 257024   ;;  %s287_s1 = inlined_call_operand.vmem [shape: bf16[128,32], index: 1, kind: input, shape index: {}]   ;;  %s288_s0 = inlined_call_operand.vmem [shape: bf16[16,128], index: 0, kind: input, shape index: {}]   ;;  %s289_s2 = inlined_call_operand.vmem [shape: f32[1,32], index: 2, kind: input, shape index: {}]   ;;  %s290_s3 = inlined_call_operand.vmem [shape: bf16[16,32], index: 3, kind: output, shape index: {}]  }
   0x1   :  { %194 = vmatprep.subr.bf16.mxu0 %v225_v0  ;;  %v216_v1 = vld [vmem:[%s287_s1] sm:$0xff]   ;;  %210 = vmatprep.mubr.msk.bf16.mxu0 %vm226_vm1, %v225_v0  ;;  %20 = vst.msk [vmem:[#allocation2] sm:$0xff] %vm19_vm0, %v225_v0  ;;  %21 = vst.msk [vmem:[#allocation2 + $0x8] sm:$0xff] %vm19_vm0, %v225_v0  ;;  %v217_v2 = vld [vmem:[%s287_s1 + $0x8] sm:$0xff]  }
   0x2   :  { %195 = vmatpush3.bf16.msra.mxu0 %v216_v1  ;;  %v218_v3 = vld [vmem:[%s287_s1 + $0x10] sm:$0xff]   ;;  %v219_v4 = vld [vmem:[%s287_s1 + $0x18] sm:$0xff]   ;;  %v220_v5 = vld [vmem:[%s287_s1 + $0x20] sm:$0xff]  }
   0x3   :  { %196 = vmatprep.subr.bf16.mxu0 %v225_v0  ;;  %v221_v6 = vld [vmem:[%s287_s1 + $0x28] sm:$0xff]   ;;  %v222_v7 = vld [vmem:[%s287_s1 + $0x30] sm:$0xff]   ;;  %v223_v8 = vld [vmem:[%s287_s1 + $0x38] sm:$0xff]  }
   0x4   :  { %v224_v9 = vld [vmem:[%s288_s0] sm:$0xff]  }
   0x5   :  { %v180_v18 = vld [vmem:[%s289_s2] ss:$0 sm:$0xff] }
   0x6   :  { %197 = vmatpush3.bf16.msra.mxu0 %v217_v2 }
   0x7   :  { %198 = vmatprep.subr.bf16.mxu0 %v225_v0 }
   0x8   :  { %v22_v10 = vld [vmem:[#allocation2] sm:$0xff]  ;;  %v23_v12 = vld [vmem:[#allocation2 + $0x8] sm:$0xff] }
   0xa   :  { %199 = vmatpush3.bf16.msra.mxu0 %v218_v3 }
   0xb   :  { %200 = vmatprep.subr.bf16.mxu0 %v225_v0 }
   0xe   :  { %201 = vmatpush3.bf16.msra.mxu0 %v219_v4 }
   0xf   :  { %202 = vmatprep.subr.bf16.mxu0 %v225_v0 }
  0x12   :  { %203 = vmatpush3.bf16.msra.mxu0 %v220_v5 }
  0x13   :  { %204 = vmatprep.subr.bf16.mxu0 %v225_v0 }
  0x16   :  { %205 = vmatpush3.bf16.msra.mxu0 %v221_v6 }
  0x17   :  { %206 = vmatprep.subr.bf16.mxu0 %v225_v0 }
  0x1a   :  { %207 = vmatpush3.bf16.msra.mxu0 %v222_v7 }
  0x1b   :  { %208 = vmatprep.subr.bf16.mxu0 %v225_v0 }
  0x1e   :  { %209 = vmatpush3.bf16.msra.mxu0 %v223_v8 }
  0x21   :  { %211 = vmatmul.mubr.bf16.vlgmr.msra.gmra.mrb[0].mxu0 %v224_v9 }
  0xf4   :  { %v130_v11 = vpop.f32.mrb[0].mxu0 }
  0xf5   :  { %v137_v13 = vadd.f32 %v130_v11, %v22_v10  ;;  %v212_v14 = vpop.f32.mrb[1].mxu0 }
  0xf6   :  { %v133_v15 = vpop.f32.mrb[2].mxu0 }
  0xf7   :  { %140 = vst.msk [vmem:[#allocation2] sm:$0xff] %vm19_vm0, %v137_v13  ;;  %v138_v16 = vadd.f32 %v133_v15, %v23_v12  ;;  %v213_v17 = vpop.f32.mrb[3].mxu0 }
  0xf9   :  { %141 = vst.msk [vmem:[#allocation2 + $0x8] sm:$0xff] %vm19_vm0, %v138_v16 }
  0xfe   :  { %v145_v19 = vld [vmem:[#allocation2] sm:$0xff] }
  0xff   :  { %v154_v20 = vadd.f32 %v180_v18, %v145_v19 }
 0x100   :  { %v146_v21 = vld [vmem:[#allocation2 + $0x8] sm:$0xff] }
 0x101   :  { %v183_v22 = vpack.c.bf16 %v154_v20, %v154_v20  ;;  %v155_v23 = vadd.f32 %v180_v18, %v146_v21 }
 0x103   :  { %165 = vst.msk [vmem:[%s290_s3] sm:$0xf] %vm164_vm2, %v183_v22  ;;  %v184_v24 = vpack.c.bf16 %v155_v23, %v155_v23 }
 0x105   :  { %166 = vst.msk [vmem:[%s290_s3 + $0x4] sm:$0xf] %vm164_vm2, %v184_v24 }

// kernel: transformer_forward.45
= control target key start
LH: loop header
LB: loop body
LE: loop exit
PB: predicated region body
PF: predicated region fallthrough
CT: control target
= control target key end

     0   :  { %s1003_s15 = smov 0   ;;  %s1115_s0 = inlined_call_operand.vmem [shape: bf16[2,8,64], index: 0, kind: input, shape index: {}]   ;;  %s1116_s1 = inlined_call_operand.vmem [shape: bf16[2,8,64], index: 1, kind: input, shape index: {}]   ;;  %s1117_s2 = inlined_call_operand.vmem [shape: s32[2,8,1], index: 2, kind: input, shape index: {}]   ;;  %s1118_s3 = inlined_call_operand.vmem [shape: s32[2,1,8], index: 3, kind: input, shape index: {}]   ;;  %s1119_s4 = inlined_call_operand.vmem [shape: bf16[2,8,32], index: 4, kind: output, shape index: {}]  }
   0x1 LB: > { %s831_s16 = sadd.s32 4294967295, %s963_s15   ;;  %p835_p0 = scmp.ge.s32.totalorder %s963_s15, 1  ;;  %s963_s15 = sphi %s1003_s15, %s14_s15  }
   0x2   : > { %p187_p1 = scmp.lt.s32.totalorder %s963_s15, 3 }
   0x4   : > { %p188_p2 = pnand %p835_p0, %p187_p1 }
   0x5   : > { %p222_p3 = scmp.lt.s32.totalorder (!%p188_p2), %s831_s16, 1  ;;  %v965_v0 = vmov (!%p188_p2), 0.0   ;;  %vm966_vm0 = vmmov (!%p188_p2), 0   ;;  %v967_v1 = vmov (!%p188_p2), 0   ;;  %vm256_vm1 = vcmask (!%p188_p2), 64512   ;;  %s968_s28 = smov (!%p188_p2), 96  }
   0x6   : > { %191 = sbr.rel (%p188_p2) target bundleno = 1489 (0x5d1), region = 36  ;;  %869 = vmatprep.subr.bf16.mxu0 (!%p188_p2), %v965_v0  ;;  %871 = vmatprep.mubr.msk.bf16.mxu0 (!%p188_p2), %vm966_vm0, %v965_v0  ;;  %s969_s29 = smov (!%p188_p2), 120   ;;  %vm325_vm3 = vcmask (!%p188_p2), 1043456   ;;  %vm738_vm4 = vcmask (!%p188_p2), 130048   ;;  %vm740_vm5 = vcmask (!%p188_p2), 195584   ;;  %vm743_vm6 = vcmask (!%p188_p2), 257024  }
   0x7   : > { %938 = vset.pattern.permute.xlu0 (!%p188_p2), %v967_v1  ;;  %875 = vmatprep.subr.bf16.mxu1 (!%p188_p2), %v965_v0  ;;  %s970_s7 = smov (!%p188_p2), 104   ;;  %s971_s8 = smov (!%p188_p2), 112  }
   0x8   : > { %877 = vmatprep.mubr.msk.bf16.mxu1 (!%p188_p2), %vm966_vm0, %v965_v0  ;;  %s972_s9 = smov (!%p188_p2), 88   ;;  %s973_s10 = smov (!%p188_p2), 80  }
   0x9   : > { %s974_s11 = smov (!%p188_p2), 72   ;;  %s975_s12 = smov (!%p188_p2), 8  }
   0xa   : > { %s976_s13 = smov (!%p188_p2), 16   ;;  %s977_s14 = smov (!%p188_p2), 24  }
   0xd   : > { %s1123_s16 = smov (!%p222_p3, %s831_s16), 1 }
   0xe   : > { %s1017_s17 = sshll.u32 %s1123_s16, 2  ;;  %s838_s18 = sshll.u32 %s1123_s16, 3 }
   0xf   : > { %s229_s21 = scalar_lea.vmem %s1116_s1, %s1017_s17  ;;  %s233_s24 = scalar_lea.vmem %s1117_s2, %s838_s18 }
  0x10   : > { %v243_v2 = vld [vmem:[%s229_s21] sm:$0xf]  ;;  %s225_s27 = scalar_lea.vmem %s1115_s0, %s1017_s17  ;;  %s236_s6 = scalar_lea.vmem %s1118_s3, %s1123_s16 }
  0x11   : > { %v261_v3 = vsel %vm256_vm1, %v243_v2, 0  ;;  %v245_v4 = vld [vmem:[%s233_s24] sm:$0xff]  ;;  %v1038_v6 = vcombine.low %v243_v2, %v243_v2  ;;  %s240_s19 = scalar_lea.vmem %s1119_s4, %s1017_s17 }
  0x12   : > { %870 = vmatpush3.bf16.xpose.msra.mxu0 %v261_v3  ;;  %248 = vperm.xlu0 %938, %v245_v4   ;;  %v1032_v5 = vld [vmem:[%s225_s27] sm:$0xf] }
  0x13   : > { %887 = vmatprep.subr.bf16.mxu0 %v965_v0  ;;  %320 = vrot.lane.b32.xlu1 %v1038_v6, %s968_s28  ;;  %v840_v7 = vld [vmem:[%s236_s6] ss:$0 sm:$0xff]  ;;  %v844_v25 = vcombine.low %v1032_v5, %v1032_v5 }
  0x17   : > { %379 = vrot.lane.b32.xlu1 %v1038_v6, %s969_s29 }
  0x19   : > { %872 = vmatmul.mubr.msk.bf16.vlgmr.msra.gmra.mrb[0].mxu0 %vm256_vm1, %v1032_v5 }
  0x1a   : > { %889 = vmatprep.mubr.msk.bf16.mxu0 %vm966_vm0, %v965_v0 }
  0x85   : > { %v321_v18 = vpop.permute.xlu1 %320 }
  0x86   : > { %v327_v19 = vsel %vm325_vm3, %v321_v18, 0 }
  0x87   : > { %876 = vmatpush3.bf16.msra.mxu1 %v327_v19 }
  0x88   : > { %881 = vmatprep.subr.bf16.mxu1 %v965_v0 }
  0x89   : > { %v380_v26 = vpop.permute.xlu1 %379 }
  0x8a   : > { %v385_v32 = vsel %vm256_vm1, %v380_v26, 0 }
  0x91   : > { %v249_v8 = vpop.permute.xlu0 %248 }
  0x92   : > { %v254_v9 = vmul.u32 %v840_v7, %v249_v8 }
  0x94   : > { %vm1046_vm2 = vcmp.gt.s32.totalorder %v254_v9, 0 }
  0xec   : > { %v297_v11 = vpop.f32.mrb[0].mxu0 }
  0xed   : > { %v303_v12 = vmul.f32 0.0625, %v297_v11  ;;  %v873_v13 = vpop.f32.mrb[1].mxu0 }
  0xee   : > { %v300_v14 = vpop.f32.mrb[2].mxu0 }
  0xef   : > { %v874_v15 = vpop.f32.mrb[3].mxu0  ;;  %v304_v16 = vsel %vm1046_vm2, %v303_v12, -1e+20 }
  0xf0   : > { %v305_v17 = vsel %vm256_vm1, %v304_v16, -inf }
  0xf1   : > { %306 = vmax.xlane.f32.xlu0 %v305_v17 }
 0x107   : > { %611 = vrot.lane.b32.xlu0 %v1038_v6, %s970_s7 }
 0x17e   : > { %v307_v20 = vpop.xlane.xlu0 %306 }
 0x17f   : > { %v308_v21 = vsub.f32 %v304_v16, %v307_v20  ;;  %v244_v16 = vunpack.c.l.bf16 %v1032_v5 }
 0x181   : > { %v309_v22 = vmul.f32 1.442695, %v308_v21 }
 0x182   : > { %v612_v35 = vpop.permute.xlu0 %611 }
 0x183   : > { %941 = vpow2.f32 %v309_v22  ;;  %v617_v37 = vsel %vm256_vm1, %v612_v35, 0 }
 0x18d   : > { %v942_v23 = vpop.eup %941 }
 0x18e   : > { %v311_v24 = vsel %vm256_vm1, %v942_v23, 0.0 }
 0x18f   : > { %312 = vadd.xlane.f32.xlu1 %v311_v24 }
 0x1a0   : > { %377 = vrot.lane.b32.xlu1 %v844_v25, %s969_s29 }
 0x1a4   : > { %495 = vrot.lane.b32.xlu1 %v1038_v6, %s971_s8 }
 0x1a8   : > { %493 = vrot.lane.b32.xlu1 %v844_v25, %s971_s8 }
 0x1ac   : > { %609 = vrot.lane.b32.xlu1 %v844_v25, %s970_s7 }
 0x21c   : > { %v313_v27 = vpop.xlane.xlu1 %312 }
 0x21d   : > { %943 = vrcp.f32 %v313_v27 }
 0x220   : > { %v378_v30 = vpop.permute.xlu1 %377 }
 0x224   : > { %v496_v33 = vpop.permute.xlu1 %495 }
 0x225   : > { %v501_v34 = vsel %vm256_vm1, %v496_v33, 0 }
 0x227   : > { %v944_v28 = vpop.eup %943 }
 0x228   : > { %v315_v29 = vmul.f32 %v944_v28, %v942_v23  ;;  %v494_v36 = vpop.permute.xlu1 %493 }
 0x22a   : > { %v316_v31 = vpack.c.bf16 %v315_v29, %v315_v29 }
 0x22c   : > { %878 = vmatmul.mubr.msk.bf16.vlgmr.msra.gmra.mrb[0].mxu1 %vm256_vm1, %v316_v31  ;;  %v610_v38 = vpop.permute.xlu1 %609 }
 0x22d   : > { %882 = vmatpush3.bf16.xpose.msra.mxu1 %v385_v32  ;;  %883 = vmatprep.mubr.msk.bf16.mxu1 %vm966_vm0, %v965_v0 }
 0x22e   : > { %893 = vmatprep.subr.bf16.mxu1 %v965_v0 }
 0x234   : > { %884 = vmatmul.mubr.msk.bf16.vlgmr.msra.gmra.mrb[4].mxu1 %vm256_vm1, %v378_v30 }
 0x235   : > { %894 = vmatpush3.bf16.xpose.msra.mxu1 %v501_v34  ;;  %895 = vmatprep.mubr.msk.bf16.mxu1 %vm966_vm0, %v965_v0 }
 0x236   : > { %905 = vmatprep.subr.bf16.mxu1 %v965_v0 }
 0x23c   : > { %896 = vmatmul.mubr.msk.bf16.vlgmr.msra.gmra.mrb[8].mxu1 %vm256_vm1, %v494_v36 }
 0x23d   : > { %906 = vmatpush3.bf16.xpose.msra.mxu1 %v617_v37  ;;  %907 = vmatprep.mubr.msk.bf16.mxu1 %vm966_vm0, %v965_v0 }
 0x244   : > { %908 = vmatmul.mubr.msk.bf16.vlgmr.msra.gmra.mrb[12].mxu1 %vm256_vm1, %v610_v38 }
 0x2ff   : > { %v1075_v39 = vpop.f32.mrb[0].mxu1 }
 0x300   : > { %v879_v40 = vpop.f32.mrb[1].mxu1 }
 0x301   : > { %v366_v41 = vpop.f32.mrb[2].mxu1 }
 0x302   : > { %v880_v42 = vpop.f32.mrb[3].mxu1 }
 0x307   : > { %v421_v43 = vpop.f32.mrb[4].mxu1 }
 0x308   : > { %v427_v44 = vmul.f32 0.0625, %v421_v43  ;;  %v885_v45 = vpop.f32.mrb[5].mxu1 }
 0x309   : > { %v424_v46 = vpop.f32.mrb[6].mxu1 }
 0x30a   : > { %v886_v47 = vpop.f32.mrb[7].mxu1  ;;  %v428_v48 = vsel %vm1046_vm2, %v427_v44, -1e+20 }
 0x30b   : > { %v429_v49 = vsel %vm256_vm1, %v428_v48, -inf }
 0x30c   : > { %430 = vmax.xlane.f32.xlu1 %v429_v49 }
 0x30f   : > { %v537_v50 = vpop.f32.mrb[8].mxu1 }
 0x310   : > { %v543_v51 = vmul.f32 0.0625, %v537_v50  ;;  %v897_v52 = vpop.f32.mrb[9].mxu1 }
 0x311   : > { %v540_v53 = vpop.f32.mrb[10].mxu1 }
 0x312   : > { %v544_v54 = vsel %vm1046_vm2, %v543_v51, -1e+20  ;;  %v898_v55 = vpop.f32.mrb[11].mxu1 }
 0x313   : > { %v545_v56 = vsel %vm256_vm1, %v544_v54, -inf }
 0x314   : > { %546 = vmax.xlane.f32.xlu0 %v545_v56 }
 0x317   : > { %v653_v57 = vpop.f32.mrb[12].mxu1 }
 0x318   : > { %v659_v58 = vmul.f32 0.0625, %v653_v57  ;;  %v909_v59 = vpop.f32.mrb[13].mxu1 }
 0x319   : > { %v656_v60 = vpop.f32.mrb[14].mxu1 }
 0x31a   : > { %v660_v61 = vsel %vm1046_vm2, %v659_v58, -1e+20  ;;  %v910_v62 = vpop.f32.mrb[15].mxu1 }
 0x31b   : > { %v661_v63 = vsel %vm256_vm1, %v660_v61, -inf }
 0x31c   : > { %662 = vmax.xlane.f32.xlu1 %v661_v63 }
 0x399   : > { %v431_v1 = vpop.xlane.xlu1 %430 }
 0x39a   : > { %v432_v2 = vsub.f32 %v428_v48, %v431_v1 }
 0x39c   : > { %v433_v3 = vmul.f32 1.442695, %v432_v2 }
 0x39e   : > { %945 = vpow2.f32 %v433_v3 }
 0x3a1   : > { %v547_v13 = vpop.xlane.xlu0 %546 }
 0x3a2   : > { %v548_v14 = vsub.f32 %v544_v54, %v547_v13 }
 0x3a4   : > { %v549_v15 = vmul.f32 1.442695, %v548_v14 }
 0x3a8   : > { %v946_v4 = vpop.eup %945 }
 0x3a9   : > { %v663_v7 = vpop.xlane.xlu1 %662  ;;  %v435_v8 = vsel %vm256_vm1, %v946_v4, 0.0 }
 0x3aa   : > { %v664_v9 = vsub.f32 %v660_v61, %v663_v7  ;;  %436 = vadd.xlane.f32.xlu1 %v435_v8 }
 0x3ac   : > { %v665_v11 = vmul.f32 1.442695, %v664_v9 }
 0x3ae   : > { %947 = vpow2.f32 %v665_v11 }
 0x3af   : > { %949 = vpow2.f32 %v549_v15 }
 0x3b8   : > { %v948_v12 = vpop.eup %947 }
 0x3b9   : > { %v667_v10 = vsel %vm256_vm1, %v948_v12, 0.0  ;;  %v950_v17 = vpop.eup %949 }
 0x3ba   : > { %668 = vadd.xlane.f32.xlu0 %v667_v10  ;;  %v551_v18 = vsel %vm256_vm1, %v950_v17, 0.0 }
 0x3bb   : > { %441 = vrot.lane.b32.xlu1 %v1038_v6, %s972_s9 }
 0x3d0   : > { %557 = vrot.lane.b32.xlu0 %v1038_v6, %s973_s10 }
 0x3d4   : > { %605 = vrot.lane.b32.xlu0 %v244_v16, %s973_s10 }
 0x3d8   : > { %370 = vrot.lane.b32.xlu0 %v244_v16, %s968_s28 }
 0x3df   : > { %552 = vadd.xlane.f32.xlu1 %v551_v18 }
 0x3f0   : > { %673 = vrot.lane.b32.xlu1 %v1038_v6, %s974_s11 }
 0x3f4   : > { %489 = vrot.lane.b32.xlu1 %v244_v16, %s972_s9 }
 0x3f8   : > { %721 = vrot.lane.b32.xlu1 %v244_v16, %s974_s11 }
 0x437   : > { %v437_v19 = vpop.xlane.xlu1 %436 }
 0x438   : > { %951 = vrcp.f32 %v437_v19 }
 0x43b   : > { %v442_v20 = vpop.permute.xlu1 %441 }
 0x43c   : > { %v447_v5 = vsel %vm325_vm3, %v442_v20, 0 }
 0x43d   : > { %888 = vmatpush3.bf16.msra.mxu0 %v447_v5 }
 0x43e   : > { %899 = vmatprep.subr.bf16.mxu0 %v965_v0 }
 0x442   : > { %v952_v21 = vpop.eup %951 }
 0x443   : > { %v439_v22 = vmul.f32 %v952_v21, %v946_v4 }
 0x445   : > { %v440_v23 = vpack.c.bf16 %v439_v22, %v439_v22 }
 0x447   : > { %890 = vmatmul.mubr.msk.bf16.vlgmr.msra.gmra.mrb[4].mxu0 %vm256_vm1, %v440_v23  ;;  %v669_v24 = vpop.xlane.xlu0 %668 }
 0x448   : > { %901 = vmatprep.mubr.msk.bf16.mxu0 %vm966_vm0, %v965_v0 }
 0x44b   : > { %v558_v6 = vpop.permute.xlu0 %557 }
 0x44c   : > { %v563_v25 = vsel %vm325_vm3, %v558_v6, 0 }
 0x44d   : > { %900 = vmatpush3.bf16.msra.mxu0 %v563_v25 }
 0x44e   : > { %911 = vmatprep.subr.bf16.mxu0 %v965_v0 }
 0x44f   : > { %v606_v42 = vpop.permute.xlu0 %605 }
 0x453   : > { %v371_v53 = vpop.permute.xlu0 %370 }
 0x454   : > { %v373_v55 = vmul.f32 %v371_v53, %v1075_v39 }
 0x46c   : > { %v553_v26 = vpop.xlane.xlu1 %552 }
 0x46d   : > { %953 = vrcp.f32 %v553_v26 }
 0x46e   : > { %955 = vrcp.f32 %v669_v24 }
 0x470   : > { %v674_v28 = vpop.permute.xlu1 %673 }
 0x471   : > { %v679_v30 = vsel %vm325_vm3, %v674_v28, 0 }
 0x474   : > { %v490_v35 = vpop.permute.xlu1 %489 }
 0x477   : > { %v954_v27 = vpop.eup %953 }
 0x478   : > { %v555_v29 = vmul.f32 %v954_v27, %v950_v17  ;;  %v956_v32 = vpop.eup %955 }
 0x479   : > { %v671_v33 = vmul.f32 %v956_v32, %v948_v12 }
 0x47a   : > { %v556_v31 = vpack.c.bf16 %v555_v29, %v555_v29 }
 0x47b   : > { %v672_v34 = vpack.c.bf16 %v671_v33, %v671_v33 }
 0x47c   : > { %902 = vmatmul.mubr.msk.bf16.vlgmr.msra.gmra.mrb[8].mxu0 %vm256_vm1, %v556_v31 }
 0x47d   : > { %912 = vmatpush3.bf16.msra.mxu0 %v679_v30  ;;  %913 = vmatprep.mubr.msk.bf16.mxu0 %vm966_vm0, %v965_v0  ;;  %v722_v0 = vpop.permute.xlu1 %721 }
 0x484   : > { %914 = vmatmul.mubr.msk.bf16.vlgmr.msra.gmra.mrb[12].mxu0 %vm256_vm1, %v672_v34 }
 0x51a   : > { %v483_v36 = vpop.f32.mrb[4].mxu0 }
 0x51b   : > { %v492_v37 = vmul.f32 %v490_v35, %v483_v36  ;;  %v891_v38 = vpop.f32.mrb[5].mxu0 }
 0x51c   : > { %v486_v40 = vpop.f32.mrb[6].mxu0 }
 0x51d   : > { %v892_v41 = vpop.f32.mrb[7].mxu0  ;;  %726 = vrot.lane.b32.xlu1 %v492_v37, %s975_s12 }
 0x54f   : > { %v599_v43 = vpop.f32.mrb[8].mxu0 }
 0x550   : > { %v608_v44 = vmul.f32 %v606_v42, %v599_v43  ;;  %v903_v45 = vpop.f32.mrb[9].mxu0 }
 0x551   : > { %v602_v46 = vpop.f32.mrb[10].mxu0 }
 0x552   : > { %v904_v47 = vpop.f32.mrb[11].mxu0  ;;  %730 = vrot.lane.b32.xlu0 %v608_v44, %s976_s13 }
 0x557   : > { %v715_v48 = vpop.f32.mrb[12].mxu0 }
 0x558   : > { %v724_v49 = vmul.f32 %v722_v0, %v715_v48  ;;  %v915_v50 = vpop.f32.mrb[13].mxu0 }
 0x559   : > { %v718_v51 = vpop.f32.mrb[14].mxu0 }
 0x55a   : > { %v916_v52 = vpop.f32.mrb[15].mxu0  ;;  %734 = vrot.lane.b32.xlu1 %v724_v49, %s977_s14 }
 0x58f   : > { %v727_v54 = vpop.permute.xlu1 %726 }
 0x590   : > { %v737_v57 = vsel %vm256_vm1, %v373_v55, %v727_v54 }
 0x5c4   : > { %v731_v56 = vpop.permute.xlu0 %730 }
 0x5c5   : > { %v739_v58 = vsel %vm738_vm4, %v737_v57, %v731_v56 }
 0x5cc   : > { %v735_v59 = vpop.permute.xlu1 %734 }
 0x5cd   : > { %v741_v60 = vsel %vm740_vm5, %v739_v58, %v735_v59 }
 0x5ce   : > { %v742_v61 = vpack.c.bf16 %v741_v60, %v741_v60 }
 0x5d0   : > { %744 = vst.msk [vmem:[%s240_s19] sm:$0xf] %vm743_vm6, %v742_v61 }
 0x5d1 PF: > { %s14_s15 = sadd.s32 1, %s963_s15  }
 0x5d2   : > { %p11_p4 = scmp.ge.s32.totalorder %s14_s15, 4  }
 0x5d4   :  { %13 = sbr.rel (!%p11_p4) target bundleno = 1 (0x1), region = 75 }

// kernel: transformer_forward.85
= control target key start
LH: loop header
LB: loop body
LE: loop exit
PB: predicated region body
PF: predicated region fallthrough
CT: control target
= control target key end

     0   :  { %v201_v2 = vmov 0   ;;  %s262_s0 = inlined_call_operand.vmem [shape: bf16[16,32], index: 0, kind: input, shape index: {}]   ;;  %s263_s1 = inlined_call_operand.vmem [shape: bf16[32,200], index: 1, kind: input, shape index: {}]   ;;  %s264_s2 = inlined_call_operand.vmem [shape: f32[1,200], index: 2, kind: input, shape index: {}]   ;;  %s265_s3 = inlined_call_operand.hbm [shape: f32[16,200], index: 3, kind: output, shape index: {}]  }
   0x1   :  { %v170_v0 = vld [vmem:[%s263_s1 + $0x4] ss:$8 sps:$4 sm:$0xff]   ;;  %v172_v1 = vld [vmem:[%s263_s1] ss:$8 sps:$4 sm:$0xff]   ;;  %96 = vmatprep.mubr.bf16.mxu0 %v201_v2  ;;  %v173_v3 = vld [vmem:[%s263_s1 + $0x14] ss:$8 sps:$4 sm:$0xff]  }
   0x2   :  { %64 = vmatprep.subr.bf16.mxu0 %v170_v0  ;;  %v175_v4 = vld [vmem:[%s263_s1 + $0x10] ss:$8 sps:$4 sm:$0xff]  }
   0x3   :  { %65 = vmatpush1.bf16.msra.mxu0 %v172_v1 }
   0x4   :  { %8 = vsyncpa [#allocation4], 0  ;;  %66 = vmatprep.subr.bf16.mxu0 %v173_v3  ;;  %v176_v5 = vld [vmem:[%s262_s0] sm:$0xff]   ;;  %vm60_vm0 = vcmask 261120   ;;  %vm21_vm1 = vcmask 588800   ;;  %v202_v6 = vmov 0.0   ;;  %v125_v7 = vlaneseq }
   0x5   :  { %22 = vst.msk [vmem:[#allocation2 + $0x8] sm:$0xff] %vm21_vm1, %v202_v6  ;;  %24 = vst.msk [vmem:[#allocation2 + $0x18] sm:$0xff] %vm21_vm1, %v202_v6  ;;  %v123_v10 = vld [vmem:[%s264_s2] sm:$0x3]  ;;  %s203_s0 = smov [#allocation3]  }
   0x6   :  { %v126_v8 = vshrl.u32 %v125_v7, 7  ;;  %s148_s2 = sshll.u32 %s203_s0, 4  ;;  %s149_s2 = int_to_ptr.vmem [resolvable:$true] %s148_s2 }
   0x7   :  { %67 = vmatpush1.bf16.msra.mxu0 %v175_v4  ;;  %s177_s23 = scalar_lea.vmem %s149_s2, 512  ;;  %p182_p1 = scmp.lt.s32.totalorder %s149_s2, %s149_s2 }
   0x8   :  { %v127_v9 = vsub.s32 0, %v126_v8  ;;  %v131_v21 = vsub.s32 1, %v126_v8  ;;  %p178_p0 = scmp.ne.s32.totalorder %s149_s2, %s177_s23  ;;  %p183_p2 = scmp.lt.s32.totalorder %s177_s23, %s177_s23 }
   0xa   :  { %164 = vmatmul.mubr.msk.bf16.vlgmr.msra.gmra.mrb[0].mxu0 %vm60_vm0, %v176_v5  ;;  %v128_v12 = vrot.slane %v123_v10, %v127_v9  ;;  %v132_v23 = vrot.slane %v123_v10, %v131_v21  ;;  %p184_p3 = por %p183_p2, %p182_p1 }
   0xc   :  { %v26_v11 = vld [vmem:[#allocation2 + $0x8] sm:$0xff]  ;;  %v28_v15 = vld [vmem:[#allocation2 + $0x18] sm:$0xff]  ;;  %p185_p4 = pnand %p184_p3, %p178_p0 }
  0xdd   :  { %v98_v13 = vpop.f32.mrb[0].mxu0 }
  0xde   :  { %v100_v14 = vpop.f32.mrb[1].mxu0  ;;  %v135_v19 = vadd.f32 %v128_v12, %v98_v13 }
  0xdf   :  { %v108_v16 = vadd.f32 %v100_v14, %v26_v11  ;;  %v102_v17 = vpop.f32.mrb[2].mxu0 }
  0xe0   :  { %v104_v18 = vpop.f32.mrb[3].mxu0  ;;  %v137_v22 = vadd.f32 %v128_v12, %v102_v17  ;;  %139 = vst [vmem:[#allocation3] sm:$0xff] %v135_v19 }
  0xe1   :  { %113 = vst.msk [vmem:[#allocation2 + $0x8] sm:$0xff] %vm21_vm1, %v108_v16  ;;  %v110_v20 = vadd.f32 %v104_v18, %v28_v15 }
  0xe2   :  { %141 = vst [vmem:[#allocation3 + $0x10] sm:$0xff] %v137_v22 }
  0xe3   :  { %115 = vst.msk [vmem:[#allocation2 + $0x18] sm:$0xff] %vm21_vm1, %v110_v20 }
  0xe8   :  { %v120_v24 = vld [vmem:[#allocation2 + $0x8] sm:$0xff] }
  0xe9   :  { %v136_v25 = vadd.f32 %v132_v23, %v120_v24 }
  0xea   :  { %v122_v26 = vld [vmem:[#allocation2 + $0x18] sm:$0xff] }
  0xeb   :  { %v138_v27 = vadd.f32 %v132_v23, %v122_v26  ;;  %140 = vst.msk [vmem:[#allocation3 + $0x8] sm:$0xff] %vm21_vm1, %v136_v25 }
  0xed   :  { %142 = vst.msk [vmem:[#allocation3 + $0x18] sm:$0xff] %vm21_vm1, %v138_v27 }
  0xee   :  { %188 = shalt.err (!%p185_p4)
}
  0xef   :  { %s189_s26 = scalar_lea.hbm %s265_s3, 512 }
  0xf0   :  { %p190_p5 = scmp.ne.s32.totalorder %s265_s3, %s189_s26  ;;  %p193_p6 = scmp.lt.u32.totalorder %s189_s26, %s265_s3 }
  0xf2   :  { %p195_p7 = pnand %p193_p6, %p190_p5 }
  0xf4   :  { %198 = shalt.err (!%p195_p7)
}
  0xf5   :  { %s204_s4 = smov 256   ;;  %s205_s5 = smov 16  }
  0xf6   :  { %154 = dma.vmem_to_hbm [thread:$0]  %s149_s2, 512, %s265_s3, [#allocation4], %s204_s4, %s204_s4, %s205_s5  }
  0xf7   :  { %199 = dma.done.wait [#allocation4], 512  }
  0xf8   :  { %200 = vsyncadd [#allocation4], 4294966784 }
  0xf9   :  { %158 = vsyncpa [#allocation4], 1 }

</bundles_post_ra>
